<compile_context>
chip_gen: v7x
topology: tpu7x:2x2x1
jax: 0.10.0
libtpu: 0.0.40
codegen_flags: <defaults>
</compile_context>

<pallas_src>
import functools

import jax
import jax.numpy as jnp
from jax.experimental import pallas as pl
from jax.experimental.pallas import tpu as pltpu

MODEL_DIM = 32
NUM_HEADS = 4
FFN_DIM = 64
DIM_PER_HEAD = MODEL_DIM // NUM_HEADS
LN_EPS = 1e-5   # torch.nn.LayerNorm default


# ----------------------------- in-kernel helpers -----------------------------

def _layernorm(z, g, b):
    mean = jnp.mean(z, axis=-1, keepdims=True)
    c = z - mean
    var = jnp.mean(c * c, axis=-1, keepdims=True)
    return c * jax.lax.rsqrt(var + LN_EPS) * g + b


# ----------------------------- the fused Pallas kernel -----------------------------

def _encoder_layer_kernel(x_ref, wqkv_ref, wo_ref, w1_ref, w2_ref, sp_ref,
                          o_ref, attn_ref, *, B, L, D, H, F):
    dph = D // H            # dim per head
    R = L // H              # flat rows of (B*L, D) covered by one (batch, head) slice
    BH = B * H              # number of attention slices
    scale = float(dph) ** -0.5

    x = x_ref[...]                                            # (B*L, D), de-interleaved rows

    # ---- fused Q|K|V projection: one (B*L, D) @ (D, 3D) MXU matmul ----
    bqkv = sp_ref[0:1, 0:3 * D]                               # (1, 3D)
    qkv = jnp.dot(x, wqkv_ref[...],
                  preferred_element_type=jnp.float32) + bqkv  # (B*L, 3D)

    # ---- head split (torch raw .view) as contiguous static 2-D blocks ----
    # De-interleaved row a*BH + i  <->  original flat row i*R + a, hence for every in-slice
    # position p = a*H + c the slice-i rows Q_i[p, :] form one contiguous (BH, dph) block:
    #   Q_i[a*H + c, :] = qkv[a*BH + i, c*dph:(c+1)*dph]
    def head_blocks(col0):
        return [qkv[a * BH:(a + 1) * BH, col0 + c * dph:col0 + (c + 1) * dph]
                for a in range(R) for c in range(H)]          # L blocks, each (BH, dph)

    qb, kb, vb = head_blocks(0), head_blocks(D), head_blocks(2 * D)
    qbig = jnp.concatenate(qb, axis=0)                        # (L*BH, dph): row p*BH+i = Q_i[p]

    # ---- scores + softmax (exact divide), all slices at once ----
    s_cols = []
    for qi in range(L):
        ktile = jnp.concatenate([kb[qi]] * L, axis=0)         # (L*BH, dph)
        s_cols.append(jnp.sum(qbig * ktile, axis=1, keepdims=True))
    s2 = jnp.concatenate(s_cols, axis=1) * scale              # (L*BH, L): [p*BH+i, q]=S_i[p,q]
    s_max = jnp.max(s2, axis=1, keepdims=True)
    e = jnp.exp(s2 - s_max)
    p2 = e / jnp.sum(e, axis=1, keepdims=True)                # softmax over q (torch dim=-1)

    # ---- context = P @ V per slice ----
    ctxbig = jnp.zeros((L * BH, dph), jnp.float32)
    for qi in range(L):
        vtile = jnp.concatenate([vb[qi]] * L, axis=0)         # (L*BH, dph)
        ctxbig = ctxbig + p2[:, qi:qi + 1] * vtile            # [p*BH+i, d] = ctx_i[p, d]

    # context.view(batch, -1, D): back to de-interleaved (B*L, D) rows
    ctx = jnp.concatenate(
        [jnp.concatenate([ctxbig[(a * H + c) * BH:(a * H + c + 1) * BH, :]
                          for c in range(H)], axis=1)
         for a in range(R)], axis=0)                          # (B*L, D)

    # lane-dense attention export: attn2[i, p*L + q] = P_i[p, q]   -> (BH, L*L)
    attn2 = jnp.concatenate([p2[p * BH:(p + 1) * BH, :] for p in range(L)], axis=1)
    attn_ref[...] = attn2.astype(attn_ref.dtype)

    # ---- out-proj + residual + LN1 + FFN (w1+ReLU, w2) + residual + LN2 (all row-wise) ----
    b1 = sp_ref[1:2, 0:F]
    bo = sp_ref[2:3, 0:D]
    b2 = sp_ref[3:4, 0:D]
    g1, be1 = sp_ref[4:5, 0:D], sp_ref[5:6, 0:D]
    g2, be2 = sp_ref[6:7, 0:D], sp_ref[7:8, 0:D]

    proj = jnp.dot(ctx, wo_ref[...], preferred_element_type=jnp.float32) + bo
    y1 = _layernorm(x + proj, g1, be1)
    h = jnp.maximum(jnp.dot(y1, w1_ref[...], preferred_element_type=jnp.float32) + b1, 0.0)
    f = jnp.dot(h, w2_ref[...], preferred_element_type=jnp.float32) + b2
    out = _layernorm(y1 + f, g2, be2)
    o_ref[...] = out.astype(o_ref.dtype)


# ----------------------------- EncoderLayer forward -----------------------------

def prepare_params(p):
    """One-time weight prep: fuse Q/K/V weights; pack all small vectors into one operand."""
    D, F = MODEL_DIM, FFN_DIM
    W = max(3 * D, F)

    def row(v):
        return jnp.zeros((W,), jnp.float32).at[:v.shape[0]].set(v)

    smalls = jnp.stack([
        row(jnp.concatenate([p["bq"], p["bk"], p["bv"]])),   # 0: qkv bias      (3D)
        row(p["b1"]),                                        # 1: ffn w1 bias   (F)
        row(p["bo"]),                                        # 2: out-proj bias (D)
        row(p["b2"]),                                        # 3: ffn w2 bias   (D)
        row(p["ln1_g"]), row(p["ln1_b"]),                    # 4,5: LayerNorm 1
        row(p["ln2_g"]), row(p["ln2_b"]),                    # 6,7: LayerNorm 2
    ], axis=0)                                               # (8, W): single DMA / VMEM tile

    return dict(
        wqkv=jnp.concatenate([p["wq"], p["wk"], p["wv"]], axis=1),   # (D, 3D)
        wo=p["wo"], w1=p["w1"], w2=p["w2"], smalls=smalls)


def encoder_layer(inputs, fp):
    """inputs: (B, L, D). Returns (output (B, L, D), attention (B*H, L, L))."""
    B, L, D = inputs.shape
    H, F = NUM_HEADS, FFN_DIM
    assert L % H == 0 and D % H == 0
    R = L // H
    BH = B * H

    # Row de-interleave on the kernel boundary (2 KB) so that inside the kernel the raw
    # `.view(batch*num_heads, -1, dim_per_head)` head split becomes contiguous 2-D blocks.
    x_flat = inputs.reshape(B * L, D)
    x_de = x_flat.reshape(BH, R, D).transpose(1, 0, 2).reshape(B * L, D)

    out_de, attn2 = pl.pallas_call(
        functools.partial(_encoder_layer_kernel, B=B, L=L, D=D, H=H, F=F),
        out_shape=(jax.ShapeDtypeStruct((B * L, D), inputs.dtype),
                   jax.ShapeDtypeStruct((BH, L * L), jnp.float32)),
        # single grid point; every operand / result fully VMEM-resident (no pipelining needed)
        in_specs=[pl.BlockSpec(memory_space=pltpu.MemorySpace.VMEM)] * 6,
        out_specs=(pl.BlockSpec(memory_space=pltpu.MemorySpace.VMEM),
                   pl.BlockSpec(memory_space=pltpu.MemorySpace.VMEM)),
    )(x_de, fp["wqkv"], fp["wo"], fp["w1"], fp["w2"], fp["smalls"])

    # undo the row de-interleave (2 KB boundary permute) and unflatten the attention matrix
    out = out_de.reshape(R, BH, D).transpose(1, 0, 2).reshape(B, L, D)
    attention = attn2.reshape(BH, L, L)
    return out, attention


# ----------------------------- pure-JAX reference -----------------------------

def encoder_layer_ref(x, p):
    B, L, D = x.shape
    H, dph = NUM_HEADS, DIM_PER_HEAD
    xf = x.reshape(B * L, D)
    q = (xf @ p["wq"] + p["bq"]).reshape(B * H, L, dph)   # raw row-major view, as in torch
    k = (xf @ p["wk"] + p["bk"]).reshape(B * H, L, dph)
    v = (xf @ p["wv"] + p["bv"]).reshape(B * H, L, dph)
    s = jnp.einsum("bld,bmd->blm", q, k) * (dph ** -0.5)
    a = jax.nn.softmax(s, axis=-1)
    ctx = jnp.einsum("blm,bmd->bld", a, v).reshape(B * L, D)
    o = ctx @ p["wo"] + p["bo"]

    def ln(z, g, b):
        m = z.mean(-1, keepdims=True)
        c = z - m
        var = (c * c).mean(-1, keepdims=True)
        return c * jax.lax.rsqrt(var + LN_EPS) * g + b

    attn_out = ln(xf + o, p["ln1_g"], p["ln1_b"])
    h = jnp.maximum(attn_out @ p["w1"] + p["b1"], 0.0)
    f = h @ p["w2"] + p["b2"]
    out = ln(attn_out + f, p["ln2_g"], p["ln2_b"])
    return out.reshape(B, L, D), a


# ----------------------------- main -----------------------------

if __name__ == "__main__":
    B, L = 2, 8
    D, F = MODEL_DIM, FFN_DIM

    key = jax.random.PRNGKey(0)
    keys = jax.random.split(key, 13)

    def init(k, shape):
        return (0.02 * jax.random.normal(k, shape)).astype(jnp.float32)

    # weights stored as (in, out); equivalent to torch Linear / Conv1d(k=1) weights transposed
    params = dict(
        wq=init(keys[0], (D, D)), bq=init(keys[1], (D,)),
        wk=init(keys[2], (D, D)), bk=init(keys[3], (D,)),
        wv=init(keys[4], (D, D)), bv=init(keys[5], (D,)),
        wo=init(keys[6], (D, D)), bo=init(keys[7], (D,)),
        ln1_g=jnp.ones((D,), jnp.float32), ln1_b=jnp.zeros((D,), jnp.float32),
        w1=init(keys[8], (D, F)), b1=init(keys[9], (F,)),
        w2=init(keys[10], (F, D)), b2=init(keys[11], (D,)),
        ln2_g=jnp.ones((D,), jnp.float32), ln2_b=jnp.zeros((D,), jnp.float32),
    )
    fused_params = prepare_params(params)

    x = jax.random.normal(keys[12], (B, L, D), jnp.float32)

    fwd = jax.jit(encoder_layer)
    out, attn = fwd(x, fused_params)
    out = jax.block_until_ready(out)
    attn = jax.block_until_ready(attn)

    ref_out, ref_attn = encoder_layer_ref(x, params)
    assert out.shape == (B, L, D) and attn.shape == (B * NUM_HEADS, L, L)
    # exact softmax divide inside the kernel -> tighter tolerance than the previous version
    assert jnp.allclose(out, ref_out, atol=1e-3, rtol=1e-3), \
        float(jnp.max(jnp.abs(out - ref_out)))
    assert jnp.allclose(attn, ref_attn, atol=1e-3, rtol=1e-3), \
        float(jnp.max(jnp.abs(attn - ref_attn)))

    print("KERNEL_OK")
</pallas_src>

<mosaic_0001>
module attributes {stable_mosaic.version = 11 : i64} {
  func.func @_encoder_layer_kernel(%arg0: memref<16x32xf32, #tpu.memory_space<vmem>>, %arg1: memref<32x96xf32, #tpu.memory_space<vmem>>, %arg2: memref<32x32xf32, #tpu.memory_space<vmem>>, %arg3: memref<32x64xf32, #tpu.memory_space<vmem>>, %arg4: memref<64x32xf32, #tpu.memory_space<vmem>>, %arg5: memref<8x96xf32, #tpu.memory_space<vmem>>, %arg6: memref<16x32xf32, #tpu.memory_space<vmem>>, %arg7: memref<8x64xf32, #tpu.memory_space<vmem>>) attributes {dimension_semantics = [], scalar_prefetch = 0 : i64, scratch_operands = 0 : i64, tpu.core_type = #tpu.core_type<tc>} {
    %c0 = arith.constant 0 : index
    %c0_0 = arith.constant 0 : index
    %0 = vector.load %arg0[%c0, %c0_0] : memref<16x32xf32, #tpu.memory_space<vmem>>, vector<16x32xf32>
    %c0_1 = arith.constant 0 : index
    %c0_2 = arith.constant 0 : index
    %1 = vector.load %arg5[%c0_1, %c0_2] : memref<8x96xf32, #tpu.memory_space<vmem>>, vector<1x96xf32>
    %c0_3 = arith.constant 0 : index
    %c0_4 = arith.constant 0 : index
    %2 = vector.load %arg1[%c0_3, %c0_4] : memref<32x96xf32, #tpu.memory_space<vmem>>, vector<32x96xf32>
    %cst = arith.constant dense<0.000000e+00> : vector<16x96xf32>
    %3 = tpu.matmul %0, %2, %cst {dimension_numbers = #tpu.dot_dimension_numbers<[1], [0], [0], [1], [0, 0, 1, 1], [], []>} : vector<16x32xf32>, vector<32x96xf32>, vector<16x96xf32> -> vector<16x96xf32>
    %4 = vector.broadcast %1 : vector<1x96xf32> to vector<16x96xf32>
    %5 = arith.addf %3, %4 : vector<16x96xf32>
    %6 = vector.extract_strided_slice %5 {offsets = [0, 0], sizes = [8, 8], strides = [1, 1]} : vector<16x96xf32> to vector<8x8xf32>
    %7 = vector.extract_strided_slice %5 {offsets = [0, 8], sizes = [8, 8], strides = [1, 1]} : vector<16x96xf32> to vector<8x8xf32>
    %8 = vector.extract_strided_slice %5 {offsets = [0, 16], sizes = [8, 8], strides = [1, 1]} : vector<16x96xf32> to vector<8x8xf32>
    %9 = vector.extract_strided_slice %5 {offsets = [0, 24], sizes = [8, 8], strides = [1, 1]} : vector<16x96xf32> to vector<8x8xf32>
    %10 = vector.extract_strided_slice %5 {offsets = [8, 0], sizes = [8, 8], strides = [1, 1]} : vector<16x96xf32> to vector<8x8xf32>
    %11 = vector.extract_strided_slice %5 {offsets = [8, 8], sizes = [8, 8], strides = [1, 1]} : vector<16x96xf32> to vector<8x8xf32>
    %12 = vector.extract_strided_slice %5 {offsets = [8, 16], sizes = [8, 8], strides = [1, 1]} : vector<16x96xf32> to vector<8x8xf32>
    %13 = vector.extract_strided_slice %5 {offsets = [8, 24], sizes = [8, 8], strides = [1, 1]} : vector<16x96xf32> to vector<8x8xf32>
    %14 = vector.extract_strided_slice %5 {offsets = [0, 32], sizes = [8, 8], strides = [1, 1]} : vector<16x96xf32> to vector<8x8xf32>
    %15 = vector.extract_strided_slice %5 {offsets = [0, 40], sizes = [8, 8], strides = [1, 1]} : vector<16x96xf32> to vector<8x8xf32>
    %16 = vector.extract_strided_slice %5 {offsets = [0, 48], sizes = [8, 8], strides = [1, 1]} : vector<16x96xf32> to vector<8x8xf32>
    %17 = vector.extract_strided_slice %5 {offsets = [0, 56], sizes = [8, 8], strides = [1, 1]} : vector<16x96xf32> to vector<8x8xf32>
    %18 = vector.extract_strided_slice %5 {offsets = [8, 32], sizes = [8, 8], strides = [1, 1]} : vector<16x96xf32> to vector<8x8xf32>
    %19 = vector.extract_strided_slice %5 {offsets = [8, 40], sizes = [8, 8], strides = [1, 1]} : vector<16x96xf32> to vector<8x8xf32>
    %20 = vector.extract_strided_slice %5 {offsets = [8, 48], sizes = [8, 8], strides = [1, 1]} : vector<16x96xf32> to vector<8x8xf32>
    %21 = vector.extract_strided_slice %5 {offsets = [8, 56], sizes = [8, 8], strides = [1, 1]} : vector<16x96xf32> to vector<8x8xf32>
    %22 = vector.extract_strided_slice %5 {offsets = [0, 64], sizes = [8, 8], strides = [1, 1]} : vector<16x96xf32> to vector<8x8xf32>
    %23 = vector.extract_strided_slice %5 {offsets = [0, 72], sizes = [8, 8], strides = [1, 1]} : vector<16x96xf32> to vector<8x8xf32>
    %24 = vector.extract_strided_slice %5 {offsets = [0, 80], sizes = [8, 8], strides = [1, 1]} : vector<16x96xf32> to vector<8x8xf32>
    %25 = vector.extract_strided_slice %5 {offsets = [0, 88], sizes = [8, 8], strides = [1, 1]} : vector<16x96xf32> to vector<8x8xf32>
    %26 = vector.extract_strided_slice %5 {offsets = [8, 64], sizes = [8, 8], strides = [1, 1]} : vector<16x96xf32> to vector<8x8xf32>
    %27 = vector.extract_strided_slice %5 {offsets = [8, 72], sizes = [8, 8], strides = [1, 1]} : vector<16x96xf32> to vector<8x8xf32>
    %28 = vector.extract_strided_slice %5 {offsets = [8, 80], sizes = [8, 8], strides = [1, 1]} : vector<16x96xf32> to vector<8x8xf32>
    %29 = vector.extract_strided_slice %5 {offsets = [8, 88], sizes = [8, 8], strides = [1, 1]} : vector<16x96xf32> to vector<8x8xf32>
    %30 = tpu.concatenate %6, %7, %8, %9, %10, %11, %12, %13 in 0 : vector<8x8xf32>, vector<8x8xf32>, vector<8x8xf32>, vector<8x8xf32>, vector<8x8xf32>, vector<8x8xf32>, vector<8x8xf32>, vector<8x8xf32> -> vector<64x8xf32>
    %31 = tpu.concatenate %14, %14, %14, %14, %14, %14, %14, %14 in 0 : vector<8x8xf32>, vector<8x8xf32>, vector<8x8xf32>, vector<8x8xf32>, vector<8x8xf32>, vector<8x8xf32>, vector<8x8xf32>, vector<8x8xf32> -> vector<64x8xf32>
    %32 = arith.mulf %30, %31 : vector<64x8xf32>
    %cst_5 = arith.constant dense<0.000000e+00> : vector<64xf32>
    %33 = vector.multi_reduction <add>, %32, %cst_5 [1] : vector<64x8xf32> to vector<64xf32>
    %34 = vector.shape_cast %33 : vector<64xf32> to vector<64x1xf32>
    %35 = tpu.concatenate %15, %15, %15, %15, %15, %15, %15, %15 in 0 : vector<8x8xf32>, vector<8x8xf32>, vector<8x8xf32>, vector<8x8xf32>, vector<8x8xf32>, vector<8x8xf32>, vector<8x8xf32>, vector<8x8xf32> -> vector<64x8xf32>
    %36 = arith.mulf %30, %35 : vector<64x8xf32>
    %cst_6 = arith.constant dense<0.000000e+00> : vector<64xf32>
    %37 = vector.multi_reduction <add>, %36, %cst_6 [1] : vector<64x8xf32> to vector<64xf32>
    %38 = vector.shape_cast %37 : vector<64xf32> to vector<64x1xf32>
    %39 = tpu.concatenate %16, %16, %16, %16, %16, %16, %16, %16 in 0 : vector<8x8xf32>, vector<8x8xf32>, vector<8x8xf32>, vector<8x8xf32>, vector<8x8xf32>, vector<8x8xf32>, vector<8x8xf32>, vector<8x8xf32> -> vector<64x8xf32>
    %40 = arith.mulf %30, %39 : vector<64x8xf32>
    %cst_7 = arith.constant dense<0.000000e+00> : vector<64xf32>
    %41 = vector.multi_reduction <add>, %40, %cst_7 [1] : vector<64x8xf32> to vector<64xf32>
    %42 = vector.shape_cast %41 : vector<64xf32> to vector<64x1xf32>
    %43 = tpu.concatenate %17, %17, %17, %17, %17, %17, %17, %17 in 0 : vector<8x8xf32>, vector<8x8xf32>, vector<8x8xf32>, vector<8x8xf32>, vector<8x8xf32>, vector<8x8xf32>, vector<8x8xf32>, vector<8x8xf32> -> vector<64x8xf32>
    %44 = arith.mulf %30, %43 : vector<64x8xf32>
    %cst_8 = arith.constant dense<0.000000e+00> : vector<64xf32>
    %45 = vector.multi_reduction <add>, %44, %cst_8 [1] : vector<64x8xf32> to vector<64xf32>
    %46 = vector.shape_cast %45 : vector<64xf32> to vector<64x1xf32>
    %47 = tpu.concatenate %18, %18, %18, %18, %18, %18, %18, %18 in 0 : vector<8x8xf32>, vector<8x8xf32>, vector<8x8xf32>, vector<8x8xf32>, vector<8x8xf32>, vector<8x8xf32>, vector<8x8xf32>, vector<8x8xf32> -> vector<64x8xf32>
    %48 = arith.mulf %30, %47 : vector<64x8xf32>
    %cst_9 = arith.constant dense<0.000000e+00> : vector<64xf32>
    %49 = vector.multi_reduction <add>, %48, %cst_9 [1] : vector<64x8xf32> to vector<64xf32>
    %50 = vector.shape_cast %49 : vector<64xf32> to vector<64x1xf32>
    %51 = tpu.concatenate %19, %19, %19, %19, %19, %19, %19, %19 in 0 : vector<8x8xf32>, vector<8x8xf32>, vector<8x8xf32>, vector<8x8xf32>, vector<8x8xf32>, vector<8x8xf32>, vector<8x8xf32>, vector<8x8xf32> -> vector<64x8xf32>
    %52 = arith.mulf %30, %51 : vector<64x8xf32>
    %cst_10 = arith.constant dense<0.000000e+00> : vector<64xf32>
    %53 = vector.multi_reduction <add>, %52, %cst_10 [1] : vector<64x8xf32> to vector<64xf32>
    %54 = vector.shape_cast %53 : vector<64xf32> to vector<64x1xf32>
    %55 = tpu.concatenate %20, %20, %20, %20, %20, %20, %20, %20 in 0 : vector<8x8xf32>, vector<8x8xf32>, vector<8x8xf32>, vector<8x8xf32>, vector<8x8xf32>, vector<8x8xf32>, vector<8x8xf32>, vector<8x8xf32> -> vector<64x8xf32>
    %56 = arith.mulf %30, %55 : vector<64x8xf32>
    %cst_11 = arith.constant dense<0.000000e+00> : vector<64xf32>
    %57 = vector.multi_reduction <add>, %56, %cst_11 [1] : vector<64x8xf32> to vector<64xf32>
    %58 = vector.shape_cast %57 : vector<64xf32> to vector<64x1xf32>
    %59 = tpu.concatenate %21, %21, %21, %21, %21, %21, %21, %21 in 0 : vector<8x8xf32>, vector<8x8xf32>, vector<8x8xf32>, vector<8x8xf32>, vector<8x8xf32>, vector<8x8xf32>, vector<8x8xf32>, vector<8x8xf32> -> vector<64x8xf32>
    %60 = arith.mulf %30, %59 : vector<64x8xf32>
    %cst_12 = arith.constant dense<0.000000e+00> : vector<64xf32>
    %61 = vector.multi_reduction <add>, %60, %cst_12 [1] : vector<64x8xf32> to vector<64xf32>
    %62 = vector.shape_cast %61 : vector<64xf32> to vector<64x1xf32>
    %63 = tpu.concatenate %34, %38, %42, %46, %50, %54, %58, %62 in 1 : vector<64x1xf32>, vector<64x1xf32>, vector<64x1xf32>, vector<64x1xf32>, vector<64x1xf32>, vector<64x1xf32>, vector<64x1xf32>, vector<64x1xf32> -> vector<64x8xf32>
    %cst_13 = arith.constant 0.353553385 : f32
    %64 = vector.broadcast %cst_13 : f32 to vector<64x8xf32>
    %65 = arith.mulf %63, %64 : vector<64x8xf32>
    %cst_14 = arith.constant dense<0xFF800000> : vector<64xf32>
    %66 = vector.multi_reduction <maximumf>, %65, %cst_14 [1] : vector<64x8xf32> to vector<64xf32>
    %67 = vector.shape_cast %66 : vector<64xf32> to vector<64x1xf32>
    %68 = vector.broadcast %67 : vector<64x1xf32> to vector<64x8xf32>
    %69 = arith.subf %65, %68 : vector<64x8xf32>
    %70 = math.exp %69 : vector<64x8xf32>
    %cst_15 = arith.constant dense<0.000000e+00> : vector<64xf32>
    %71 = vector.multi_reduction <add>, %70, %cst_15 [1] : vector<64x8xf32> to vector<64xf32>
    %72 = vector.shape_cast %71 : vector<64xf32> to vector<64x1xf32>
    %73 = vector.broadcast %72 : vector<64x1xf32> to vector<64x8xf32>
    %74 = arith.divf %70, %73 : vector<64x8xf32>
    %cst_16 = arith.constant 0.000000e+00 : f32
    %75 = vector.broadcast %cst_16 : f32 to vector<64x8xf32>
    %76 = tpu.concatenate %22, %22, %22, %22, %22, %22, %22, %22 in 0 : vector<8x8xf32>, vector<8x8xf32>, vector<8x8xf32>, vector<8x8xf32>, vector<8x8xf32>, vector<8x8xf32>, vector<8x8xf32>, vector<8x8xf32> -> vector<64x8xf32>
    %77 = vector.extract_strided_slice %74 {offsets = [0, 0], sizes = [64, 1], strides = [1, 1]} : vector<64x8xf32> to vector<64x1xf32>
    %78 = vector.broadcast %77 : vector<64x1xf32> to vector<64x8xf32>
    %79 = arith.mulf %78, %76 : vector<64x8xf32>
    %80 = arith.addf %75, %79 : vector<64x8xf32>
    %81 = tpu.concatenate %23, %23, %23, %23, %23, %23, %23, %23 in 0 : vector<8x8xf32>, vector<8x8xf32>, vector<8x8xf32>, vector<8x8xf32>, vector<8x8xf32>, vector<8x8xf32>, vector<8x8xf32>, vector<8x8xf32> -> vector<64x8xf32>
    %82 = vector.extract_strided_slice %74 {offsets = [0, 1], sizes = [64, 1], strides = [1, 1]} : vector<64x8xf32> to vector<64x1xf32>
    %83 = vector.broadcast %82 : vector<64x1xf32> to vector<64x8xf32>
    %84 = arith.mulf %83, %81 : vector<64x8xf32>
    %85 = arith.addf %80, %84 : vector<64x8xf32>
    %86 = tpu.concatenate %24, %24, %24, %24, %24, %24, %24, %24 in 0 : vector<8x8xf32>, vector<8x8xf32>, vector<8x8xf32>, vector<8x8xf32>, vector<8x8xf32>, vector<8x8xf32>, vector<8x8xf32>, vector<8x8xf32> -> vector<64x8xf32>
    %87 = vector.extract_strided_slice %74 {offsets = [0, 2], sizes = [64, 1], strides = [1, 1]} : vector<64x8xf32> to vector<64x1xf32>
    %88 = vector.broadcast %87 : vector<64x1xf32> to vector<64x8xf32>
    %89 = arith.mulf %88, %86 : vector<64x8xf32>
    %90 = arith.addf %85, %89 : vector<64x8xf32>
    %91 = tpu.concatenate %25, %25, %25, %25, %25, %25, %25, %25 in 0 : vector<8x8xf32>, vector<8x8xf32>, vector<8x8xf32>, vector<8x8xf32>, vector<8x8xf32>, vector<8x8xf32>, vector<8x8xf32>, vector<8x8xf32> -> vector<64x8xf32>
    %92 = vector.extract_strided_slice %74 {offsets = [0, 3], sizes = [64, 1], strides = [1, 1]} : vector<64x8xf32> to vector<64x1xf32>
    %93 = vector.broadcast %92 : vector<64x1xf32> to vector<64x8xf32>
    %94 = arith.mulf %93, %91 : vector<64x8xf32>
    %95 = arith.addf %90, %94 : vector<64x8xf32>
    %96 = tpu.concatenate %26, %26, %26, %26, %26, %26, %26, %26 in 0 : vector<8x8xf32>, vector<8x8xf32>, vector<8x8xf32>, vector<8x8xf32>, vector<8x8xf32>, vector<8x8xf32>, vector<8x8xf32>, vector<8x8xf32> -> vector<64x8xf32>
    %97 = vector.extract_strided_slice %74 {offsets = [0, 4], sizes = [64, 1], strides = [1, 1]} : vector<64x8xf32> to vector<64x1xf32>
    %98 = vector.broadcast %97 : vector<64x1xf32> to vector<64x8xf32>
    %99 = arith.mulf %98, %96 : vector<64x8xf32>
    %100 = arith.addf %95, %99 : vector<64x8xf32>
    %101 = tpu.concatenate %27, %27, %27, %27, %27, %27, %27, %27 in 0 : vector<8x8xf32>, vector<8x8xf32>, vector<8x8xf32>, vector<8x8xf32>, vector<8x8xf32>, vector<8x8xf32>, vector<8x8xf32>, vector<8x8xf32> -> vector<64x8xf32>
    %102 = vector.extract_strided_slice %74 {offsets = [0, 5], sizes = [64, 1], strides = [1, 1]} : vector<64x8xf32> to vector<64x1xf32>
    %103 = vector.broadcast %102 : vector<64x1xf32> to vector<64x8xf32>
    %104 = arith.mulf %103, %101 : vector<64x8xf32>
    %105 = arith.addf %100, %104 : vector<64x8xf32>
    %106 = tpu.concatenate %28, %28, %28, %28, %28, %28, %28, %28 in 0 : vector<8x8xf32>, vector<8x8xf32>, vector<8x8xf32>, vector<8x8xf32>, vector<8x8xf32>, vector<8x8xf32>, vector<8x8xf32>, vector<8x8xf32> -> vector<64x8xf32>
    %107 = vector.extract_strided_slice %74 {offsets = [0, 6], sizes = [64, 1], strides = [1, 1]} : vector<64x8xf32> to vector<64x1xf32>
    %108 = vector.broadcast %107 : vector<64x1xf32> to vector<64x8xf32>
    %109 = arith.mulf %108, %106 : vector<64x8xf32>
    %110 = arith.addf %105, %109 : vector<64x8xf32>
    %111 = tpu.concatenate %29, %29, %29, %29, %29, %29, %29, %29 in 0 : vector<8x8xf32>, vector<8x8xf32>, vector<8x8xf32>, vector<8x8xf32>, vector<8x8xf32>, vector<8x8xf32>, vector<8x8xf32>, vector<8x8xf32> -> vector<64x8xf32>
    %112 = vector.extract_strided_slice %74 {offsets = [0, 7], sizes = [64, 1], strides = [1, 1]} : vector<64x8xf32> to vector<64x1xf32>
    %113 = vector.broadcast %112 : vector<64x1xf32> to vector<64x8xf32>
    %114 = arith.mulf %113, %111 : vector<64x8xf32>
    %115 = arith.addf %110, %114 : vector<64x8xf32>
    %116 = vector.extract_strided_slice %115 {offsets = [0, 0], sizes = [8, 8], strides = [1, 1]} : vector<64x8xf32> to vector<8x8xf32>
    %117 = vector.extract_strided_slice %115 {offsets = [8, 0], sizes = [8, 8], strides = [1, 1]} : vector<64x8xf32> to vector<8x8xf32>
    %118 = vector.extract_strided_slice %115 {offsets = [16, 0], sizes = [8, 8], strides = [1, 1]} : vector<64x8xf32> to vector<8x8xf32>
    %119 = vector.extract_strided_slice %115 {offsets = [24, 0], sizes = [8, 8], strides = [1, 1]} : vector<64x8xf32> to vector<8x8xf32>
    %120 = tpu.concatenate %116, %117, %118, %119 in 1 : vector<8x8xf32>, vector<8x8xf32>, vector<8x8xf32>, vector<8x8xf32> -> vector<8x32xf32>
    %121 = vector.extract_strided_slice %115 {offsets = [32, 0], sizes = [8, 8], strides = [1, 1]} : vector<64x8xf32> to vector<8x8xf32>
    %122 = vector.extract_strided_slice %115 {offsets = [40, 0], sizes = [8, 8], strides = [1, 1]} : vector<64x8xf32> to vector<8x8xf32>
    %123 = vector.extract_strided_slice %115 {offsets = [48, 0], sizes = [8, 8], strides = [1, 1]} : vector<64x8xf32> to vector<8x8xf32>
    %124 = vector.extract_strided_slice %115 {offsets = [56, 0], sizes = [8, 8], strides = [1, 1]} : vector<64x8xf32> to vector<8x8xf32>
    %125 = tpu.concatenate %121, %122, %123, %124 in 1 : vector<8x8xf32>, vector<8x8xf32>, vector<8x8xf32>, vector<8x8xf32> -> vector<8x32xf32>
    %126 = tpu.concatenate %120, %125 in 0 : vector<8x32xf32>, vector<8x32xf32> -> vector<16x32xf32>
    %127 = vector.extract_strided_slice %74 {offsets = [0, 0], sizes = [8, 8], strides = [1, 1]} : vector<64x8xf32> to vector<8x8xf32>
    %128 = vector.extract_strided_slice %74 {offsets = [8, 0], sizes = [8, 8], strides = [1, 1]} : vector<64x8xf32> to vector<8x8xf32>
    %129 = vector.extract_strided_slice %74 {offsets = [16, 0], sizes = [8, 8], strides = [1, 1]} : vector<64x8xf32> to vector<8x8xf32>
    %130 = vector.extract_strided_slice %74 {offsets = [24, 0], sizes = [8, 8], strides = [1, 1]} : vector<64x8xf32> to vector<8x8xf32>
    %131 = vector.extract_strided_slice %74 {offsets = [32, 0], sizes = [8, 8], strides = [1, 1]} : vector<64x8xf32> to vector<8x8xf32>
    %132 = vector.extract_strided_slice %74 {offsets = [40, 0], sizes = [8, 8], strides = [1, 1]} : vector<64x8xf32> to vector<8x8xf32>
    %133 = vector.extract_strided_slice %74 {offsets = [48, 0], sizes = [8, 8], strides = [1, 1]} : vector<64x8xf32> to vector<8x8xf32>
    %134 = vector.extract_strided_slice %74 {offsets = [56, 0], sizes = [8, 8], strides = [1, 1]} : vector<64x8xf32> to vector<8x8xf32>
    %135 = tpu.concatenate %127, %128, %129, %130, %131, %132, %133, %134 in 1 : vector<8x8xf32>, vector<8x8xf32>, vector<8x8xf32>, vector<8x8xf32>, vector<8x8xf32>, vector<8x8xf32>, vector<8x8xf32>, vector<8x8xf32> -> vector<8x64xf32>
    %c0_17 = arith.constant 0 : index
    %c0_18 = arith.constant 0 : index
    %136 = vector.load %arg7[%c0_17, %c0_18] : memref<8x64xf32, #tpu.memory_space<vmem>>, vector<8x64xf32>
    tpu.vector_store %arg7[%c0_17, %c0_18], %135 {strides = array<i32>} : memref<8x64xf32, #tpu.memory_space<vmem>>, vector<8x64xf32>,
    %c1 = arith.constant 1 : index
    %c0_19 = arith.constant 0 : index
    %137 = vector.load %arg5[%c1, %c0_19] : memref<8x96xf32, #tpu.memory_space<vmem>>, vector<1x64xf32>
    %c2 = arith.constant 2 : index
    %c0_20 = arith.constant 0 : index
    %138 = vector.load %arg5[%c2, %c0_20] : memref<8x96xf32, #tpu.memory_space<vmem>>, vector<1x32xf32>
    %c3 = arith.constant 3 : index
    %c0_21 = arith.constant 0 : index
    %139 = vector.load %arg5[%c3, %c0_21] : memref<8x96xf32, #tpu.memory_space<vmem>>, vector<1x32xf32>
    %c4 = arith.constant 4 : index
    %c0_22 = arith.constant 0 : index
    %140 = vector.load %arg5[%c4, %c0_22] : memref<8x96xf32, #tpu.memory_space<vmem>>, vector<1x32xf32>
    %c5 = arith.constant 5 : index
    %c0_23 = arith.constant 0 : index
    %141 = vector.load %arg5[%c5, %c0_23] : memref<8x96xf32, #tpu.memory_space<vmem>>, vector<1x32xf32>
    %c6 = arith.constant 6 : index
    %c0_24 = arith.constant 0 : index
    %142 = vector.load %arg5[%c6, %c0_24] : memref<8x96xf32, #tpu.memory_space<vmem>>, vector<1x32xf32>
    %c7 = arith.constant 7 : index
    %c0_25 = arith.constant 0 : index
    %143 = vector.load %arg5[%c7, %c0_25] : memref<8x96xf32, #tpu.memory_space<vmem>>, vector<1x32xf32>
    %c0_26 = arith.constant 0 : index
    %c0_27 = arith.constant 0 : index
    %144 = vector.load %arg2[%c0_26, %c0_27] : memref<32x32xf32, #tpu.memory_space<vmem>>, vector<32x32xf32>
    %cst_28 = arith.constant dense<0.000000e+00> : vector<16x32xf32>
    %145 = tpu.matmul %126, %144, %cst_28 {dimension_numbers = #tpu.dot_dimension_numbers<[1], [0], [0], [1], [0, 0, 1, 1], [], []>} : vector<16x32xf32>, vector<32x32xf32>, vector<16x32xf32> -> vector<16x32xf32>
    %146 = vector.broadcast %138 : vector<1x32xf32> to vector<16x32xf32>
    %147 = arith.addf %145, %146 : vector<16x32xf32>
    %148 = arith.addf %0, %147 : vector<16x32xf32>
    %cst_29 = arith.constant dense<0.000000e+00> : vector<16xf32>
    %149 = vector.multi_reduction <add>, %148, %cst_29 [1] : vector<16x32xf32> to vector<16xf32>
    %150 = vector.shape_cast %149 : vector<16xf32> to vector<16x1xf32>
    %cst_30 = arith.constant 3.200000e+01 : f32
    %151 = vector.broadcast %cst_30 : f32 to vector<16x1xf32>
    %152 = arith.divf %150, %151 : vector<16x1xf32>
    %153 = vector.broadcast %152 : vector<16x1xf32> to vector<16x32xf32>
    %154 = arith.subf %148, %153 : vector<16x32xf32>
    %155 = arith.mulf %154, %154 : vector<16x32xf32>
    %cst_31 = arith.constant dense<0.000000e+00> : vector<16xf32>
    %156 = vector.multi_reduction <add>, %155, %cst_31 [1] : vector<16x32xf32> to vector<16xf32>
    %157 = vector.shape_cast %156 : vector<16xf32> to vector<16x1xf32>
    %cst_32 = arith.constant 3.200000e+01 : f32
    %158 = vector.broadcast %cst_32 : f32 to vector<16x1xf32>
    %159 = arith.divf %157, %158 : vector<16x1xf32>
    %cst_33 = arith.constant 9.99999974E-6 : f32
    %160 = vector.broadcast %cst_33 : f32 to vector<16x1xf32>
    %161 = arith.addf %159, %160 : vector<16x1xf32>
    %162 = math.rsqrt %161 : vector<16x1xf32>
    %163 = vector.broadcast %162 : vector<16x1xf32> to vector<16x32xf32>
    %164 = arith.mulf %154, %163 : vector<16x32xf32>
    %165 = vector.broadcast %140 : vector<1x32xf32> to vector<16x32xf32>
    %166 = arith.mulf %164, %165 : vector<16x32xf32>
    %167 = vector.broadcast %141 : vector<1x32xf32> to vector<16x32xf32>
    %168 = arith.addf %166, %167 : vector<16x32xf32>
    %c0_34 = arith.constant 0 : index
    %c0_35 = arith.constant 0 : index
    %169 = vector.load %arg3[%c0_34, %c0_35] : memref<32x64xf32, #tpu.memory_space<vmem>>, vector<32x64xf32>
    %cst_36 = arith.constant dense<0.000000e+00> : vector<16x64xf32>
    %170 = tpu.matmul %168, %169, %cst_36 {dimension_numbers = #tpu.dot_dimension_numbers<[1], [0], [0], [1], [0, 0, 1, 1], [], []>} : vector<16x32xf32>, vector<32x64xf32>, vector<16x64xf32> -> vector<16x64xf32>
    %171 = vector.broadcast %137 : vector<1x64xf32> to vector<16x64xf32>
    %172 = arith.addf %170, %171 : vector<16x64xf32>
    %cst_37 = arith.constant 0.000000e+00 : f32
    %173 = vector.broadcast %cst_37 : f32 to vector<16x64xf32>
    %174 = arith.maximumf %172, %173 : vector<16x64xf32>
    %c0_38 = arith.constant 0 : index
    %c0_39 = arith.constant 0 : index
    %175 = vector.load %arg4[%c0_38, %c0_39] : memref<64x32xf32, #tpu.memory_space<vmem>>, vector<64x32xf32>
    %cst_40 = arith.constant dense<0.000000e+00> : vector<16x32xf32>
    %176 = tpu.matmul %174, %175, %cst_40 {dimension_numbers = #tpu.dot_dimension_numbers<[1], [0], [0], [1], [0, 0, 1, 1], [], []>} : vector<16x64xf32>, vector<64x32xf32>, vector<16x32xf32> -> vector<16x32xf32>
    %177 = vector.broadcast %139 : vector<1x32xf32> to vector<16x32xf32>
    %178 = arith.addf %176, %177 : vector<16x32xf32>
    %179 = arith.addf %168, %178 : vector<16x32xf32>
    %cst_41 = arith.constant dense<0.000000e+00> : vector<16xf32>
    %180 = vector.multi_reduction <add>, %179, %cst_41 [1] : vector<16x32xf32> to vector<16xf32>
    %181 = vector.shape_cast %180 : vector<16xf32> to vector<16x1xf32>
    %cst_42 = arith.constant 3.200000e+01 : f32
    %182 = vector.broadcast %cst_42 : f32 to vector<16x1xf32>
    %183 = arith.divf %181, %182 : vector<16x1xf32>
    %184 = vector.broadcast %183 : vector<16x1xf32> to vector<16x32xf32>
    %185 = arith.subf %179, %184 : vector<16x32xf32>
    %186 = arith.mulf %185, %185 : vector<16x32xf32>
    %cst_43 = arith.constant dense<0.000000e+00> : vector<16xf32>
    %187 = vector.multi_reduction <add>, %186, %cst_43 [1] : vector<16x32xf32> to vector<16xf32>
    %188 = vector.shape_cast %187 : vector<16xf32> to vector<16x1xf32>
    %cst_44 = arith.constant 3.200000e+01 : f32
    %189 = vector.broadcast %cst_44 : f32 to vector<16x1xf32>
    %190 = arith.divf %188, %189 : vector<16x1xf32>
    %cst_45 = arith.constant 9.99999974E-6 : f32
    %191 = vector.broadcast %cst_45 : f32 to vector<16x1xf32>
    %192 = arith.addf %190, %191 : vector<16x1xf32>
    %193 = math.rsqrt %192 : vector<16x1xf32>
    %194 = vector.broadcast %193 : vector<16x1xf32> to vector<16x32xf32>
    %195 = arith.mulf %185, %194 : vector<16x32xf32>
    %196 = vector.broadcast %142 : vector<1x32xf32> to vector<16x32xf32>
    %197 = arith.mulf %195, %196 : vector<16x32xf32>
    %198 = vector.broadcast %143 : vector<1x32xf32> to vector<16x32xf32>
    %199 = arith.addf %197, %198 : vector<16x32xf32>
    %c0_46 = arith.constant 0 : index
    %c0_47 = arith.constant 0 : index
    %200 = vector.load %arg6[%c0_46, %c0_47] : memref<16x32xf32, #tpu.memory_space<vmem>>, vector<16x32xf32>
    tpu.vector_store %arg6[%c0_46, %c0_47], %199 {strides = array<i32>} : memref<16x32xf32, #tpu.memory_space<vmem>>, vector<16x32xf32>,
    return
  }
}

</mosaic_0001>

<bundles_post_ra>
// kernel: encoder_layer.1
= control target key start
LH: loop header
LB: loop body
LE: loop exit
PB: predicated region body
PF: predicated region fallthrough
CT: control target
= control target key end

     0   :  { %vm36_vm0 = vcmask 261120   ;;  %s1833_s15 = smov 120   ;;  %s1834_s16 = smov 104   ;;  %vm149_vm1 = vcmask 64512   ;;  %vm419_vm2 = vcmask 7168   ;;  %vm437_vm3 = vcmask 23552   ;;  %s2677_s1 = inlined_call_operand.vmem [shape: f32[32,96], index: 1, kind: input, shape index: {}]   ;;  %s2678_s0 = inlined_call_operand.vmem [shape: f32[16,32], index: 0, kind: input, shape index: {}]   ;;  %s2679_s5 = inlined_call_operand.vmem [shape: f32[8,96], index: 5, kind: input, shape index: {}]   ;;  %s2680_s2 = inlined_call_operand.vmem [shape: f32[32,32], index: 2, kind: input, shape index: {}]   ;;  %s2681_s3 = inlined_call_operand.vmem [shape: f32[32,64], index: 3, kind: input, shape index: {}]   ;;  %s2682_s4 = inlined_call_operand.vmem [shape: f32[64,32], index: 4, kind: input, shape index: {}]   ;;  %s2683_s7 = inlined_call_operand.vmem [shape: f32[8,64], index: 7, kind: output, shape index: {1}]   ;;  %s2684_s6 = inlined_call_operand.vmem [shape: f32[16,32], index: 6, kind: output, shape index: {0}]  }
   0x1   :  { %v28_v0 = vld [vmem:[%s2677_s1] sm:$0xff]  ;;  %v29_v1 = vld [vmem:[%s2677_s1 + $0x8] sm:$0xff]  ;;  %v30_v2 = vld [vmem:[%s2677_s1 + $0x10] sm:$0xff]  ;;  %s1835_s17 = smov 96   ;;  %s1836_s18 = smov 88   ;;  %vm428_vm4 = vcmask 15360  }
   0x2   :  { %v1702_v3 = vpack.c.bf16 %v29_v1, %v28_v0  ;;  %v31_v4 = vld [vmem:[%s2677_s1 + $0x18] sm:$0xff]  ;;  %v25_v5 = vld [vmem:[%s2678_s0] sm:$0xff]  ;;  %v26_v7 = vld [vmem:[%s2678_s0 + $0x8] sm:$0xff]  ;;  %s1832_s1 = smov 112   ;;  %s1837_s19 = smov 80   ;;  %vm446_vm5 = vcmask 31744  }
   0x3   :  { %v1706_v6 = vpack.c.bf16 %v31_v4, %v30_v2  ;;  %1658 = vmatprep.mubr.msk.f32.mxu0 %vm36_vm0, %v25_v5  ;;  %v1606_v8 = vld [vmem:[%s2679_s5] ss:$0 sm:$0xff]  ;;  %s1838_s20 = smov 72   ;;  %vm455_vm6 = vcmask 39936   ;;  %vm464_vm7 = vcmask 48128   ;;  %vm473_vm8 = vcmask 56320  }
   0x4   :  { %1703 = vmatprep.subr.bf16.mxu0 %v1702_v3  ;;  %s1847_s21 = smov 64   ;;  %vm1179_vm9 = vcmask 130048   ;;  %vm1181_vm10 = vcmask 195584   ;;  %s1849_s12 = smov 24   ;;  %vm1233_vm11 = vcmask 523264   ;;  %vm1227_vm12 = vcmask 326656  }
   0x5   :  { %1705 = vmatpush3.bf16.msra.mxu0 %v1702_v3  ;;  %vm1229_vm13 = vcmask 392192   ;;  %vm1231_vm14 = vcmask 457728  }
   0x6   :  { %1707 = vmatprep.subr.bf16.mxu0 %v1706_v6 }
   0x9   :  { %1709 = vmatpush3.bf16.msra.mxu0 %v1706_v6 }
   0xc   :  { %1659 = vmatmul.mubr.msk.f32.vlgmr.msra.gmra.mrb[0].mxu0 %vm36_vm0, %v26_v7 }
  0xdf   :  { %v1660_v9 = vpop.f32.mrb[0].mxu0 }
  0xe0   :  { %v1918_v10 = vadd.f32 %v1660_v9, %v1606_v8  ;;  %v109_v11 = vpop.f32.mrb[1].mxu0 }
  0xe1   :  { %v1931_v12 = vadd.f32 %v1606_v8, %v109_v11 }
  0xe2   :  { %132 = vrot.lane.b32.xlu1 %v1918_v10, %s1832_s1  ;;  %129 = vrot.lane.b32.xlu0 %v1918_v10, %s1833_s15 }
  0xe6   :  { %135 = vrot.lane.b32.xlu1 %v1918_v10, %s1834_s16  ;;  %279 = vrot.lane.b32.xlu0 %v1918_v10, %s1835_s17 }
  0xea   :  { %314 = vrot.lane.b32.xlu1 %v1918_v10, %s1836_s18  ;;  %349 = vrot.lane.b32.xlu0 %v1918_v10, %s1837_s19 }
  0xee   :  { %384 = vrot.lane.b32.xlu1 %v1918_v10, %s1838_s20  ;;  %119 = vrot.lane.b32.xlu0 %v1931_v12, %s1833_s15 }
  0xf2   :  { %174 = vrot.lane.b32.xlu1 %v1931_v12, %s1836_s18  ;;  %138 = vrot.lane.b32.xlu0 %v1931_v12, %s1835_s17 }
  0xf6   :  { %122 = vrot.lane.b32.xlu1 %v1931_v12, %s1832_s1  ;;  %125 = vrot.lane.b32.xlu0 %v1931_v12, %s1834_s16 }
  0xfa   :  { %209 = vrot.lane.b32.xlu1 %v1931_v12, %s1837_s19  ;;  %244 = vrot.lane.b32.xlu0 %v1931_v12, %s1838_s20 }
 0x154   :  { %v1948_v13 = vpop.permute.xlu1 %132  ;;  %v1950_v14 = vpop.permute.xlu0 %129 }
 0x158   :  { %v1952_v15 = vpop.permute.xlu1 %135  ;;  %v1954_v16 = vpop.permute.xlu0 %279 }
 0x159   :  { %v287_v17 = vmul.f32 %v1954_v16, %v1950_v14  ;;  %v282_v18 = vmul.f32 %v1954_v16, %v1931_v12  ;;  %v286_v21 = vmul.f32 %v1954_v16, %v1918_v10  ;;  %v288_v34 = vmul.f32 %v1954_v16, %v1948_v13 }
 0x15a   :  { %v289_v48 = vmul.f32 %v1954_v16, %v1952_v15 }
 0x15b   :  { %v305_v19 = vsel %vm149_vm1, %v287_v17, 0.0  ;;  %v290_v20 = vsel %vm149_vm1, %v282_v18, 0.0  ;;  %v302_v26 = vsel %vm149_vm1, %v286_v21, 0.0  ;;  %v308_v37 = vsel %vm149_vm1, %v288_v34, 0.0 }
 0x15c   :  { %v1964_v22 = vpop.permute.xlu1 %314  ;;  %v1966_v23 = vpop.permute.xlu0 %349  ;;  %306 = vadd.xlane.f32.xlu0 %v305_v19  ;;  %291 = vadd.xlane.f32.xlu1 %v290_v20  ;;  %v311_v50 = vsel %vm149_vm1, %v289_v48, 0.0 }
 0x15d   :  { %v322_v24 = vmul.f32 %v1964_v22, %v1950_v14  ;;  %v357_v27 = vmul.f32 %v1966_v23, %v1950_v14  ;;  %v317_v28 = vmul.f32 %v1964_v22, %v1931_v12  ;;  %v321_v39 = vmul.f32 %v1964_v22, %v1918_v10 }
 0x15e   :  { %v352_v44 = vmul.f32 %v1966_v23, %v1931_v12  ;;  %v323_v52 = vmul.f32 %v1964_v22, %v1948_v13  ;;  %v356_v57 = vmul.f32 %v1966_v23, %v1918_v10  ;;  %v324_v2 = vmul.f32 %v1964_v22, %v1952_v15 }
 0x15f   :  { %v340_v25 = vsel %vm149_vm1, %v322_v24, 0.0  ;;  %v375_v31 = vsel %vm149_vm1, %v357_v27, 0.0  ;;  %v325_v32 = vsel %vm149_vm1, %v317_v28, 0.0  ;;  %v337_v42 = vsel %vm149_vm1, %v321_v39, 0.0 }
 0x160   :  { %v1976_v29 = vpop.permute.xlu1 %384  ;;  %341 = vadd.xlane.f32.xlu0 %v340_v25  ;;  %v1978_v30 = vpop.permute.xlu0 %119  ;;  %303 = vadd.xlane.f32.xlu1 %v302_v26  ;;  %v360_v46 = vsel %vm149_vm1, %v352_v44, 0.0  ;;  %v343_v55 = vsel %vm149_vm1, %v323_v52, 0.0  ;;  %v372_v59 = vsel %vm149_vm1, %v356_v57, 0.0  ;;  %v346_v4 = vsel %vm149_vm1, %v324_v2, 0.0 }
 0x161   :  { %v392_v33 = vmul.f32 %v1976_v29, %v1950_v14  ;;  %v387_v61 = vmul.f32 %v1976_v29, %v1931_v12  ;;  %v358_v6 = vmul.f32 %v1966_v23, %v1948_v13  ;;  %v391_v17 = vmul.f32 %v1976_v29, %v1918_v10 }
 0x162   :  { %v359_v21 = vmul.f32 %v1966_v23, %v1952_v15 }
 0x163   :  { %v410_v36 = vsel %vm149_vm1, %v392_v33, 0.0  ;;  %v395_v0 = vsel %vm149_vm1, %v387_v61, 0.0  ;;  %v378_v9 = vsel %vm149_vm1, %v358_v6, 0.0  ;;  %v407_v19 = vsel %vm149_vm1, %v391_v17, 0.0 }
 0x164   :  { %376 = vadd.xlane.f32.xlu0 %v375_v31  ;;  %v1986_v35 = vpop.permute.xlu0 %138  ;;  %326 = vadd.xlane.f32.xlu1 %v325_v32  ;;  %v1994_v40 = vpop.permute.xlu1 %174  ;;  %v381_v26 = vsel %vm149_vm1, %v359_v21, 0.0  ;;  %v353_v17 = vmul.f32 %v1966_v23, %v1978_v30 }
 0x165   :  { %v141_v38 = vmul.f32 %v1986_v35, %v1931_v12  ;;  %v177_v43 = vmul.f32 %v1994_v40, %v1931_v12  ;;  %v178_v47 = vmul.f32 %v1994_v40, %v1978_v30  ;;  %v145_v51 = vmul.f32 %v1986_v35, %v1918_v10 }
 0x166   :  { %v182_v60 = vmul.f32 %v1994_v40, %v1950_v14  ;;  %v147_v5 = vmul.f32 %v1986_v35, %v1948_v13  ;;  %v183_v11 = vmul.f32 %v1994_v40, %v1948_v13  ;;  %v142_v28 = vmul.f32 %v1986_v35, %v1978_v30 }
 0x167   :  { %v150_v41 = vsel %vm149_vm1, %v141_v38, 0.0  ;;  %v185_v45 = vsel %vm149_vm1, %v177_v43, 0.0  ;;  %v188_v49 = vsel %vm149_vm1, %v178_v47, 0.0  ;;  %v162_v54 = vsel %vm149_vm1, %v145_v51, 0.0 }
 0x168   :  { %411 = vadd.xlane.f32.xlu0 %v410_v36  ;;  %309 = vadd.xlane.f32.xlu1 %v308_v37  ;;  %v2014_v53 = vpop.permute.xlu1 %122  ;;  %v200_v63 = vsel %vm149_vm1, %v182_v60, 0.0  ;;  %v2042_v7 = vpop.permute.xlu0 %125  ;;  %v168_v8 = vsel %vm149_vm1, %v147_v5, 0.0  ;;  %v203_v18 = vsel %vm149_vm1, %v183_v11, 0.0  ;;  %v153_v32 = vsel %vm149_vm1, %v142_v28, 0.0 }
 0x169   :  { %v179_v56 = vmul.f32 %v1994_v40, %v2014_v53  ;;  %v148_v33 = vmul.f32 %v1986_v35, %v1952_v15  ;;  %v143_v34 = vmul.f32 %v1986_v35, %v2014_v53  ;;  %v146_v39 = vmul.f32 %v1986_v35, %v1950_v14 }
 0x16a   :  { %v181_v44 = vmul.f32 %v1994_v40, %v1918_v10  ;;  %v283_v51 = vmul.f32 %v1954_v16, %v1978_v30  ;;  %v144_v52 = vmul.f32 %v1986_v35, %v2042_v7  ;;  %v180_v57 = vmul.f32 %v1994_v40, %v2042_v7 }
 0x16b   :  { %v191_v58 = vsel %vm149_vm1, %v179_v56, 0.0  ;;  %v171_v36 = vsel %vm149_vm1, %v148_v33, 0.0  ;;  %v156_v37 = vsel %vm149_vm1, %v143_v34, 0.0  ;;  %v284_v35 = vmul.f32 %v1954_v16, %v2014_v53 }
 0x16c   :  { %151 = vadd.xlane.f32.xlu0 %v150_v41  ;;  %338 = vadd.xlane.f32.xlu1 %v337_v42  ;;  %v2028_v62 = vpop.permute.xlu1 %209  ;;  %v2056_v24 = vpop.permute.xlu0 %244  ;;  %v165_v42 = vsel %vm149_vm1, %v146_v39, 0.0  ;;  %v389_v39 = vmul.f32 %v1976_v29, %v2014_v53 }
 0x16d   :  { %v213_v1 = vmul.f32 %v2028_v62, %v1978_v30  ;;  %v216_v20 = vmul.f32 %v2028_v62, %v1918_v10  ;;  %v247_v27 = vmul.f32 %v2056_v24, %v1931_v12  ;;  %v215_v38 = vmul.f32 %v2028_v62, %v2042_v7 }
 0x16e   :  { %v249_v43 = vmul.f32 %v2056_v24, %v2014_v53  ;;  %v252_v47 = vmul.f32 %v2056_v24, %v1950_v14  ;;  %v212_v48 = vmul.f32 %v2028_v62, %v1931_v12  ;;  %v250_v56 = vmul.f32 %v2056_v24, %v2042_v7 }
 0x16f   :  { %v223_v3 = vsel %vm149_vm1, %v213_v1, 0.0  ;;  %v232_v25 = vsel %vm149_vm1, %v216_v20, 0.0  ;;  %v255_v31 = vsel %vm149_vm1, %v247_v27, 0.0  ;;  %v229_v41 = vsel %vm149_vm1, %v215_v38, 0.0 }
 0x170   :  { %186 = vadd.xlane.f32.xlu0 %v185_v45  ;;  %361 = vadd.xlane.f32.xlu1 %v360_v46  ;;  %v261_v45 = vsel %vm149_vm1, %v249_v43, 0.0  ;;  %v197_v46 = vsel %vm149_vm1, %v181_v44, 0.0  ;;  %v214_v60 = vmul.f32 %v2028_v62, %v2014_v53  ;;  %v296_v61 = vsel %vm149_vm1, %v284_v35, 0.0 }
 0x171   :  { %v217_v1 = vmul.f32 %v2028_v62, %v1950_v14  ;;  %v248_v5 = vmul.f32 %v2056_v24, %v1978_v30  ;;  %v319_v14 = vmul.f32 %v1964_v22, %v2014_v53  ;;  %v251_v21 = vmul.f32 %v2056_v24, %v1918_v10 }
 0x172   :  { %v354_v27 = vmul.f32 %v1966_v23, %v2014_v53  ;;  %v219_v28 = vmul.f32 %v2028_v62, %v1952_v15  ;;  %v253_v33 = vmul.f32 %v2056_v24, %v1948_v13  ;;  %v394_v44 = vmul.f32 %v1976_v29, %v1952_v15 }
 0x173   :  { %v331_v11 = vsel %vm149_vm1, %v319_v14, 0.0 }
 0x174   :  { %189 = vadd.xlane.f32.xlu0 %v188_v49  ;;  %312 = vadd.xlane.f32.xlu1 %v311_v50  ;;  %v270_v49 = vsel %vm149_vm1, %v252_v47, 0.0  ;;  %v220_v50 = vsel %vm149_vm1, %v212_v48, 0.0  ;;  %v416_v53 = vsel %vm149_vm1, %v394_v44, 0.0 }
 0x178   :  { %163 = vadd.xlane.f32.xlu0 %v162_v54  ;;  %344 = vadd.xlane.f32.xlu1 %v343_v55  ;;  %v293_v54 = vsel %vm149_vm1, %v283_v51, 0.0  ;;  %v159_v55 = vsel %vm149_vm1, %v144_v52, 0.0 }
 0x17c   :  { %192 = vadd.xlane.f32.xlu0 %v191_v58  ;;  %373 = vadd.xlane.f32.xlu1 %v372_v59  ;;  %v264_v58 = vsel %vm149_vm1, %v250_v56, 0.0  ;;  %v194_v59 = vsel %vm149_vm1, %v180_v57, 0.0 }
 0x180   :  { %201 = vadd.xlane.f32.xlu0 %v200_v63  ;;  %396 = vadd.xlane.f32.xlu1 %v395_v0  ;;  %v226_v63 = vsel %vm149_vm1, %v214_v60, 0.0  ;;  %v318_v0 = vmul.f32 %v1964_v22, %v1978_v30 }
 0x182   :  { %v328_v2 = vsel %vm149_vm1, %v318_v0, 0.0 }
 0x184   :  { %224 = vadd.xlane.f32.xlu0 %v223_v3  ;;  %347 = vadd.xlane.f32.xlu1 %v346_v4  ;;  %v235_v3 = vsel %vm149_vm1, %v217_v1, 0.0  ;;  %v285_v4 = vmul.f32 %v1954_v16, %v2042_v7 }
 0x186   :  { %v299_v6 = vsel %vm149_vm1, %v285_v4, 0.0 }
 0x188   :  { %169 = vadd.xlane.f32.xlu0 %v168_v8  ;;  %379 = vadd.xlane.f32.xlu1 %v378_v9  ;;  %v258_v8 = vsel %vm149_vm1, %v248_v5, 0.0  ;;  %v184_v9 = vmul.f32 %v1994_v40, %v1952_v15  ;;  %v320_v40 = vmul.f32 %v1964_v22, %v2042_v7  ;;  %v241_v22 = vsel %vm149_vm1, %v219_v28, 0.0 }
 0x18a   :  { %v206_v16 = vsel %vm149_vm1, %v184_v9, 0.0 }
 0x18c   :  { %204 = vadd.xlane.f32.xlu0 %v203_v18  ;;  %408 = vadd.xlane.f32.xlu1 %v407_v19  ;;  %v218_v18 = vmul.f32 %v2028_v62, %v1948_v13  ;;  %v363_v19 = vsel %vm149_vm1, %v353_v17, 0.0  ;;  %v355_v62 = vmul.f32 %v1966_v23, %v2042_v7 }
 0x18e   :  { %v238_v20 = vsel %vm149_vm1, %v218_v18, 0.0  ;;  %v369_v38 = vsel %vm149_vm1, %v355_v62, 0.0 }
 0x190   :  { %233 = vadd.xlane.f32.xlu0 %v232_v25  ;;  %382 = vadd.xlane.f32.xlu1 %v381_v26  ;;  %v334_v25 = vsel %vm149_vm1, %v320_v40, 0.0  ;;  %v267_v26 = vsel %vm149_vm1, %v251_v21, 0.0 }
 0x194   :  { %256 = vadd.xlane.f32.xlu0 %v255_v31  ;;  %154 = vadd.xlane.f32.xlu1 %v153_v32  ;;  %v366_v31 = vsel %vm149_vm1, %v354_v27, 0.0  ;;  %v388_v32 = vmul.f32 %v1976_v29, %v1978_v30 }
 0x196   :  { %v398_v34 = vsel %vm149_vm1, %v388_v32, 0.0 }
 0x198   :  { %172 = vadd.xlane.f32.xlu0 %v171_v36  ;;  %157 = vadd.xlane.f32.xlu1 %v156_v37  ;;  %v273_v36 = vsel %vm149_vm1, %v253_v33, 0.0  ;;  %v254_v37 = vmul.f32 %v2056_v24, %v1952_v15  ;;  %v390_v24 = vmul.f32 %v1976_v29, %v2042_v7 }
 0x19a   :  { %v276_v30 = vsel %vm149_vm1, %v254_v37, 0.0  ;;  %v404_v43 = vsel %vm149_vm1, %v390_v24, 0.0 }
 0x19c   :  { %230 = vadd.xlane.f32.xlu0 %v229_v41  ;;  %166 = vadd.xlane.f32.xlu1 %v165_v42  ;;  %v393_v41 = vmul.f32 %v1976_v29, %v1948_v13  ;;  %v401_v42 = vsel %vm149_vm1, %v389_v39, 0.0 }
 0x19e   :  { %v413_v23 = vsel %vm149_vm1, %v393_v41, 0.0 }
 0x1a0   :  { %262 = vadd.xlane.f32.xlu0 %v261_v45  ;;  %198 = vadd.xlane.f32.xlu1 %v197_v46 }
 0x1a4   :  { %271 = vadd.xlane.f32.xlu0 %v270_v49  ;;  %221 = vadd.xlane.f32.xlu1 %v220_v50 }
 0x1a8   :  { %294 = vadd.xlane.f32.xlu0 %v293_v54  ;;  %160 = vadd.xlane.f32.xlu1 %v159_v55 }
 0x1ac   :  { %265 = vadd.xlane.f32.xlu0 %v264_v58  ;;  %195 = vadd.xlane.f32.xlu1 %v194_v59 }
 0x1b0   :  { %297 = vadd.xlane.f32.xlu0 %v296_v61  ;;  %227 = vadd.xlane.f32.xlu1 %v226_v63 }
 0x1b4   :  { %329 = vadd.xlane.f32.xlu0 %v328_v2  ;;  %236 = vadd.xlane.f32.xlu1 %v235_v3 }
 0x1b8   :  { %300 = vadd.xlane.f32.xlu0 %v299_v6  ;;  %259 = vadd.xlane.f32.xlu1 %v258_v8 }
 0x1bc   :  { %332 = vadd.xlane.f32.xlu0 %v331_v11  ;;  %207 = vadd.xlane.f32.xlu1 %v206_v16 }
 0x1c0   :  { %364 = vadd.xlane.f32.xlu0 %v363_v19  ;;  %239 = vadd.xlane.f32.xlu1 %v238_v20 }
 0x1c4   :  { %335 = vadd.xlane.f32.xlu0 %v334_v25  ;;  %268 = vadd.xlane.f32.xlu1 %v267_v26 }
 0x1c8   :  { %367 = vadd.xlane.f32.xlu0 %v366_v31  ;;  %242 = vadd.xlane.f32.xlu1 %v241_v22 }
 0x1cc   :  { %399 = vadd.xlane.f32.xlu0 %v398_v34  ;;  %274 = vadd.xlane.f32.xlu1 %v273_v36 }
 0x1d0   :  { %370 = vadd.xlane.f32.xlu0 %v369_v38  ;;  %277 = vadd.xlane.f32.xlu1 %v276_v30 }
 0x1d4   :  { %402 = vadd.xlane.f32.xlu0 %v401_v42  ;;  %414 = vadd.xlane.f32.xlu1 %v413_v23 }
 0x1d8   :  { %405 = vadd.xlane.f32.xlu0 %v404_v43 }
 0x1dc   :  { %417 = vadd.xlane.f32.xlu0 %v416_v53 }
 0x1e9   :  { %v2168_v13 = vpop.xlane.xlu0 %306  ;;  %v292_v45 = vpop.xlane.xlu1 %291 }
 0x1ed   :  { %v2170_v46 = vpop.xlane.xlu0 %341  ;;  %v2172_v47 = vpop.xlane.xlu1 %303 }
 0x1f1   :  { %v2174_v48 = vpop.xlane.xlu0 %376  ;;  %v327_v7 = vpop.xlane.xlu1 %326 }
 0x1f5   :  { %v2176_v49 = vpop.xlane.xlu0 %411  ;;  %v2178_v50 = vpop.xlane.xlu1 %309 }
 0x1f9   :  { %v152_v51 = vpop.xlane.xlu0 %151  ;;  %v2180_v15 = vpop.xlane.xlu1 %338 }
 0x1fd   :  { %v187_v29 = vpop.xlane.xlu0 %186  ;;  %v362_v52 = vpop.xlane.xlu1 %361 }
 0x1fe   :  { %v420_v19 = vsel %vm419_vm2, %v152_v51, %v187_v29 }
 0x201   :  { %v190_v54 = vpop.xlane.xlu0 %189  ;;  %v2182_v55 = vpop.xlane.xlu1 %312 }
 0x205   :  { %v164_v56 = vpop.xlane.xlu0 %163  ;;  %v2184_v57 = vpop.xlane.xlu1 %344 }
 0x209   :  { %v2186_v58 = vpop.xlane.xlu0 %192  ;;  %v2188_v59 = vpop.xlane.xlu1 %373 }
 0x20d   :  { %v202_v35 = vpop.xlane.xlu0 %201  ;;  %v397_v60 = vpop.xlane.xlu1 %396 }
 0x211   :  { %v225_v61 = vpop.xlane.xlu0 %224  ;;  %v2190_v63 = vpop.xlane.xlu1 %347 }
 0x215   :  { %v2192_v0 = vpop.xlane.xlu0 %169  ;;  %v2194_v1 = vpop.xlane.xlu1 %379 }
 0x219   :  { %v2196_v2 = vpop.xlane.xlu0 %204  ;;  %v2198_v3 = vpop.xlane.xlu1 %408 }
 0x21d   :  { %v234_v4 = vpop.xlane.xlu0 %233  ;;  %v2200_v5 = vpop.xlane.xlu1 %382 }
 0x221   :  { %v257_v6 = vpop.xlane.xlu0 %256  ;;  %v155_v8 = vpop.xlane.xlu1 %154 }
 0x222   :  { %v421_v53 = vsel %vm419_vm2, %v155_v8, %v190_v54 }
 0x225   :  { %v2202_v14 = vpop.xlane.xlu0 %172  ;;  %v158_v9 = vpop.xlane.xlu1 %157 }
 0x229   :  { %v2204_v11 = vpop.xlane.xlu0 %230  ;;  %v167_v16 = vpop.xlane.xlu1 %166 }
 0x22d   :  { %v2206_v17 = vpop.xlane.xlu0 %262  ;;  %v199_v18 = vpop.xlane.xlu1 %198 }
 0x231   :  { %v272_v20 = vpop.xlane.xlu0 %271  ;;  %v222_v40 = vpop.xlane.xlu1 %221 }
 0x232   :  { %v429_v21 = vsel %vm428_vm4, %v420_v19, %v222_v40 }
 0x233   :  { %v438_v25 = vsel %vm437_vm3, %v429_v21, %v257_v6 }
 0x234   :  { %v447_v26 = vsel %vm446_vm5, %v438_v25, %v292_v45  ;;  %v424_v45 = vsel %vm419_vm2, %v164_v56, %v199_v18 }
 0x235   :  { %v295_v27 = vpop.xlane.xlu0 %294  ;;  %v161_v28 = vpop.xlane.xlu1 %160  ;;  %v456_v31 = vsel %vm455_vm6, %v447_v26, %v327_v7  ;;  %v430_v7 = vsel %vm428_vm4, %v421_v53, %v225_v61  ;;  %v433_v29 = vsel %vm428_vm4, %v424_v45, %v234_v4 }
 0x236   :  { %v465_v22 = vsel %vm464_vm7, %v456_v31, %v362_v52 }
 0x237   :  { %v474_v32 = vsel %vm473_vm8, %v465_v22, %v397_v60  ;;  %v425_v60 = vsel %vm419_vm2, %v167_v16, %v202_v35  ;;  %v422_v16 = vsel %vm419_vm2, %v158_v9, %v2186_v58 }
 0x238   :  { %v2215_v33 = vmul.f32 0.35355338, %v474_v32 }
 0x239   :  { %v2217_v34 = vpop.xlane.xlu0 %265  ;;  %v196_v36 = vpop.xlane.xlu1 %195 }
 0x23a   :  { %v490_v62 = vsel %vm149_vm1, %v2215_v33, -inf  ;;  %v423_v9 = vsel %vm419_vm2, %v161_v28, %v196_v36 }
 0x23b   :  { %491 = vmax.xlane.f32.xlu1 %v490_v62 }
 0x23d   :  { %v298_v37 = vpop.xlane.xlu0 %297  ;;  %v228_v38 = vpop.xlane.xlu1 %227 }
 0x23e   :  { %v431_v25 = vsel %vm428_vm4, %v422_v16, %v228_v38 }
 0x241   :  { %v330_v30 = vpop.xlane.xlu0 %329  ;;  %v237_v39 = vpop.xlane.xlu1 %236 }
 0x242   :  { %v434_v40 = vsel %vm428_vm4, %v425_v60, %v237_v39 }
 0x243   :  { %v443_v4 = vsel %vm437_vm3, %v434_v40, %v272_v20  ;;  %v426_v20 = vsel %vm419_vm2, %v2192_v0, %v2196_v2 }
 0x245   :  { %v301_v41 = vpop.xlane.xlu0 %300  ;;  %v260_v42 = vpop.xlane.xlu1 %259 }
 0x246   :  { %v439_v6 = vsel %vm437_vm3, %v430_v7, %v260_v42 }
 0x247   :  { %v448_v56 = vsel %vm446_vm5, %v439_v6, %v295_v27 }
 0x248   :  { %v457_v18 = vsel %vm455_vm6, %v448_v56, %v330_v30 }
 0x249   :  { %v333_v23 = vpop.xlane.xlu0 %332  ;;  %v208_v24 = vpop.xlane.xlu1 %207 }
 0x24a   :  { %v427_v28 = vsel %vm419_vm2, %v2202_v14, %v208_v24 }
 0x24d   :  { %v365_v43 = vpop.xlane.xlu0 %364  ;;  %v240_v44 = vpop.xlane.xlu1 %239 }
 0x24e   :  { %v435_v31 = vsel %vm428_vm4, %v426_v20, %v240_v44 }
 0x251   :  { %v336_v51 = vpop.xlane.xlu0 %335  ;;  %v269_v52 = vpop.xlane.xlu1 %268 }
 0x252   :  { %v442_v19 = vsel %vm437_vm3, %v433_v29, %v269_v52 }
 0x253   :  { %v451_v21 = vsel %vm446_vm5, %v442_v19, %v2172_v47  ;;  %v452_v47 = vsel %vm446_vm5, %v443_v4, %v2168_v13  ;;  %v440_v13 = vsel %vm437_vm3, %v431_v25, %v2206_v17 }
 0x254   :  { %v460_v54 = vsel %vm455_vm6, %v451_v21, %v2180_v15  ;;  %v466_v15 = vsel %vm464_vm7, %v457_v18, %v365_v43  ;;  %v461_v62 = vsel %vm455_vm6, %v452_v47, %v2170_v46  ;;  %v449_v36 = vsel %vm446_vm5, %v440_v13, %v298_v37 }
 0x255   :  { %v368_v61 = vpop.xlane.xlu0 %367  ;;  %v243_v8 = vpop.xlane.xlu1 %242  ;;  %v469_v35 = vsel %vm464_vm7, %v460_v54, %v2188_v59  ;;  %v470_v46 = vsel %vm464_vm7, %v461_v62, %v2174_v48  ;;  %v458_v42 = vsel %vm455_vm6, %v449_v36, %v333_v23 }
 0x256   :  { %v478_v58 = vsel %vm473_vm8, %v469_v35, %v2198_v3  ;;  %v432_v3 = vsel %vm428_vm4, %v423_v9, %v2204_v11  ;;  %v436_v17 = vsel %vm428_vm4, %v427_v28, %v243_v8  ;;  %v467_v11 = vsel %vm464_vm7, %v458_v42, %v368_v61 }
 0x257   :  { %v486_v30 = vmul.f32 0.35355338, %v478_v58  ;;  %v441_v37 = vsel %vm437_vm3, %v432_v3, %v2217_v34  ;;  %v479_v48 = vsel %vm473_vm8, %v470_v46, %v2176_v49  ;;  %v1839_v58 = vmov 1  }
 0x258   :  { %v450_v23 = vsel %vm446_vm5, %v441_v37, %v301_v41  ;;  %v487_v6 = vmul.f32 0.35355338, %v479_v48  ;;  %1765 = vset.pattern.permute.xlu1 %v1839_v58  ;;  %1766 = vset.pattern.permute.xlu0 %v1839_v58 }
 0x259   :  { %v400_v26 = vpop.xlane.xlu0 %399  ;;  %v275_v27 = vpop.xlane.xlu1 %274  ;;  %v502_v14 = vsel %vm149_vm1, %v486_v30, -inf  ;;  %v459_v29 = vsel %vm455_vm6, %v450_v23, %v336_v51 }
 0x25a   :  { %v475_v59 = vsel %vm473_vm8, %v466_v15, %v400_v26  ;;  %v444_v32 = vsel %vm437_vm3, %v435_v31, %v275_v27 }
 0x25b   :  { %v483_v22 = vmul.f32 0.35355338, %v475_v59  ;;  %v453_v39 = vsel %vm446_vm5, %v444_v32, %v2178_v50 }
 0x25c   :  { %v462_v50 = vsel %vm455_vm6, %v453_v39, %v2184_v57 }
 0x25d   :  { %v371_v38 = vpop.xlane.xlu0 %370  ;;  %v278_v0 = vpop.xlane.xlu1 %277  ;;  %v493_v2 = vsel %vm149_vm1, %v483_v22, -inf  ;;  %v471_v52 = vsel %vm464_vm7, %v462_v50, %v2194_v1  ;;  %v505_v1 = vsel %vm149_vm1, %v487_v6, -inf }
 0x25e   :  { %494 = vmax.xlane.f32.xlu0 %v493_v2  ;;  %v445_v43 = vsel %vm437_vm3, %v436_v17, %v278_v0  ;;  %v468_v34 = vsel %vm464_vm7, %v459_v29, %v371_v38 }
 0x25f   :  { %v454_v53 = vsel %vm446_vm5, %v445_v43, %v2182_v55 }
 0x260   :  { %v463_v55 = vsel %vm455_vm6, %v454_v53, %v2190_v63 }
 0x261   :  { %v403_v44 = vpop.xlane.xlu0 %402  ;;  %v415_v7 = vpop.xlane.xlu1 %414  ;;  %v472_v21 = vsel %vm464_vm7, %v463_v55, %v2200_v5  ;;  %v1840_v55 = vmov 2  }
 0x262   :  { %v476_v24 = vsel %vm473_vm8, %v467_v11, %v403_v44  ;;  %503 = vmax.xlane.f32.xlu0 %v502_v14  ;;  %v480_v49 = vsel %vm473_vm8, %v471_v52, %v415_v7 }
 0x263   :  { %v484_v45 = vmul.f32 0.35355338, %v476_v24  ;;  %v488_v40 = vmul.f32 0.35355338, %v480_v49 }
 0x265   :  { %v406_v60 = vpop.xlane.xlu0 %405  ;;  %v496_v57 = vsel %vm149_vm1, %v484_v45, -inf  ;;  %v508_v4 = vsel %vm149_vm1, %v488_v40, -inf }
 0x266   :  { %v477_v41 = vsel %vm473_vm8, %v468_v34, %v406_v60  ;;  %497 = vmax.xlane.f32.xlu1 %v496_v57 }
 0x267   :  { %v485_v19 = vmul.f32 0.35355338, %v477_v41 }
 0x269   :  { %v418_v51 = vpop.xlane.xlu0 %417  ;;  %v499_v54 = vsel %vm149_vm1, %v485_v19, -inf }
 0x26a   :  { %v481_v56 = vsel %vm473_vm8, %v472_v21, %v418_v51  ;;  %506 = vmax.xlane.f32.xlu1 %v505_v1  ;;  %500 = vmax.xlane.f32.xlu0 %v499_v54 }
 0x26b   :  { %v489_v61 = vmul.f32 0.35355338, %v481_v56 }
 0x26d   :  { %v511_v8 = vsel %vm149_vm1, %v489_v61, -inf }
 0x26e   :  { %512 = vmax.xlane.f32.xlu0 %v511_v8  ;;  %509 = vmax.xlane.f32.xlu1 %v508_v4  ;;  %v1841_v4 = vmov 3  }
 0x2c8   :  { %v492_v63 = vpop.xlane.xlu1 %491 }
 0x2c9   :  { %v514_v35 = vsub.f32 %v2215_v33, %v492_v63 }
 0x2cb   :  { %v522_v16 = vmul.f32 1.442695, %v514_v35 }
 0x2cd   :  { %1790 = vpow2.f32 %v522_v16 }
 0x2d7   :  { %v1791_v5 = vpop.eup %1790 }
 0x2d8   :  { %v538_v18 = vsel %vm149_vm1, %v1791_v5, 0.0 }
 0x2d9   :  { %539 = vadd.xlane.f32.xlu1 %v538_v18  ;;  %v1842_v18 = vmov 5  }
 0x2eb   :  { %v495_v25 = vpop.xlane.xlu0 %494 }
 0x2ec   :  { %v515_v47 = vsub.f32 %v483_v22, %v495_v25 }
 0x2ee   :  { %v524_v15 = vmul.f32 1.442695, %v515_v47  ;;  %v1843_v47 = vmov 6  }
 0x2ef   :  { %v504_v26 = vpop.xlane.xlu0 %503 }
 0x2f0   :  { %1792 = vpow2.f32 %v524_v15  ;;  %v518_v27 = vsub.f32 %v486_v30, %v504_v26  ;;  %v1844_v15 = vmov 7   ;;  %v1845_v26 = vmov 0  }
 0x2f2   :  { %v530_v20 = vmul.f32 1.442695, %v518_v27  ;;  %v1846_v27 = vmov 4  }
 0x2f3   :  { %v498_v59 = vpop.xlane.xlu1 %497 }
 0x2f4   :  { %1794 = vpow2.f32 %v530_v20  ;;  %v516_v33 = vsub.f32 %v484_v45, %v498_v59 }
 0x2f6   :  { %v526_v9 = vmul.f32 1.442695, %v516_v33 }
 0x2f7   :  { %v501_v31 = vpop.xlane.xlu0 %500  ;;  %v507_v13 = vpop.xlane.xlu1 %506 }
 0x2f8   :  { %1796 = vpow2.f32 %v526_v9  ;;  %v517_v32 = vsub.f32 %v485_v19, %v501_v31  ;;  %v519_v62 = vsub.f32 %v487_v6, %v507_v13 }
 0x2fa   :  { %v1793_v22 = vpop.eup %1792  ;;  %v528_v38 = vmul.f32 1.442695, %v517_v32  ;;  %v532_v0 = vmul.f32 1.442695, %v519_v62 }
 0x2fb   :  { %v513_v2 = vpop.xlane.xlu0 %512  ;;  %v510_v30 = vpop.xlane.xlu1 %509  ;;  %v541_v3 = vsel %vm149_vm1, %v1793_v22, 0.0 }
 0x2fc   :  { %1798 = vpow2.f32 %v528_v38  ;;  %v521_v28 = vsub.f32 %v489_v61, %v513_v2  ;;  %v520_v36 = vsub.f32 %v488_v40, %v510_v30  ;;  %542 = vadd.xlane.f32.xlu0 %v541_v3 }
 0x2fd   :  { %1800 = vpow2.f32 %v532_v0 }
 0x2fe   :  { %v1795_v17 = vpop.eup %1794  ;;  %v536_v39 = vmul.f32 1.442695, %v521_v28  ;;  %v534_v46 = vmul.f32 1.442695, %v520_v36 }
 0x2ff   :  { %v550_v42 = vsel %vm149_vm1, %v1795_v17, 0.0 }
 0x300   :  { %1802 = vpow2.f32 %v536_v39  ;;  %551 = vadd.xlane.f32.xlu0 %v550_v42 }
 0x301   :  { %1804 = vpow2.f32 %v534_v46 }
 0x302   :  { %v1797_v43 = vpop.eup %1796 }
 0x303   :  { %v544_v11 = vsel %vm149_vm1, %v1797_v43, 0.0 }
 0x304   :  { %545 = vadd.xlane.f32.xlu1 %v544_v11 }
 0x306   :  { %v1799_v44 = vpop.eup %1798 }
 0x307   :  { %v1801_v14 = vpop.eup %1800  ;;  %v547_v37 = vsel %vm149_vm1, %v1799_v44, 0.0 }
 0x308   :  { %548 = vadd.xlane.f32.xlu0 %v547_v37  ;;  %v553_v24 = vsel %vm149_vm1, %v1801_v14, 0.0 }
 0x309   :  { %554 = vadd.xlane.f32.xlu1 %v553_v24 }
 0x30a   :  { %v1803_v50 = vpop.eup %1802 }
 0x30b   :  { %v1805_v48 = vpop.eup %1804  ;;  %v559_v23 = vsel %vm149_vm1, %v1803_v50, 0.0 }
 0x30c   :  { %560 = vadd.xlane.f32.xlu0 %v559_v23  ;;  %v556_v53 = vsel %vm149_vm1, %v1805_v48, 0.0 }
 0x30d   :  { %557 = vadd.xlane.f32.xlu1 %v556_v53 }
 0x366   :  { %v540_v45 = vpop.xlane.xlu1 %539 }
 0x367   :  { %1806 = vrcp.f32 %v540_v45 }
 0x371   :  { %v1807_v7 = vpop.eup %1806 }
 0x372   :  { %v2309_v29 = vmul.f32 %v1807_v7, %v1791_v5 }
 0x374   :  { %635 = vperm.xlu1 %1765, %v2309_v29  }
 0x389   :  { %v543_v34 = vpop.xlane.xlu0 %542 }
 0x38a   :  { %1808 = vrcp.f32 %v543_v34 }
 0x38d   :  { %v552_v52 = vpop.xlane.xlu0 %551 }
 0x391   :  { %v546_v60 = vpop.xlane.xlu1 %545 }
 0x392   :  { %1810 = vrcp.f32 %v546_v60 }
 0x393   :  { %1812 = vrcp.f32 %v552_v52 }
 0x394   :  { %v1809_v57 = vpop.eup %1808 }
 0x395   :  { %v2312_v6 = vmul.f32 %v1809_v57, %v1793_v22  ;;  %v549_v49 = vpop.xlane.xlu0 %548 }
 0x396   :  { %1814 = vrcp.f32 %v549_v49  ;;  %v555_v41 = vpop.xlane.xlu1 %554 }
 0x397   :  { %639 = vperm.xlu0 %1766, %v2312_v6   ;;  %1816 = vrcp.f32 %v555_v41 }
 0x399   :  { %v561_v35 = vpop.xlane.xlu0 %560 }
 0x39a   :  { %v558_v51 = vpop.xlane.xlu1 %557 }
 0x39b   :  { %1769 = vset.pattern.permute.xlu0 %v1840_v55  ;;  %1818 = vrcp.f32 %v558_v51 }
 0x39c   :  { %v1811_v19 = vpop.eup %1810  ;;  %1820 = vrcp.f32 %v561_v35 }
 0x39d   :  { %v2315_v40 = vmul.f32 %v1811_v19, %v1797_v43  ;;  %v1813_v21 = vpop.eup %1812 }
 0x39e   :  { %v2319_v54 = vmul.f32 %v1813_v21, %v1795_v17 }
 0x39f   :  { %723 = vperm.xlu0 %1769, %v2315_v40   ;;  %643 = vperm.xlu1 %1765, %v2315_v40  }
 0x3a0   :  { %v1815_v1 = vpop.eup %1814 }
 0x3a1   :  { %v2321_v56 = vmul.f32 %v1815_v1, %v1799_v44  ;;  %v1817_v61 = vpop.eup %1816 }
 0x3a2   :  { %v2325_v8 = vmul.f32 %v1817_v61, %v1801_v14 }
 0x3a3   :  { %727 = vperm.xlu0 %1769, %v2321_v56   ;;  %651 = vperm.xlu1 %1765, %v2319_v54  }
 0x3a5   :  { %v1819_v63 = vpop.eup %1818 }
 0x3a6   :  { %v2331_v16 = vmul.f32 %v1819_v63, %v1805_v48  ;;  %v1821_v5 = vpop.eup %1820 }
 0x3a7   :  { %1771 = vset.pattern.permute.xlu0 %v1841_v4  ;;  %655 = vperm.xlu1 %1765, %v2325_v8   ;;  %v2339_v25 = vmul.f32 %v1821_v5, %v1803_v50 }
 0x3a8   :  { %795 = vperm.xlu0 %1771, %v2309_v29  }
 0x3ab   :  { %647 = vperm.xlu1 %1765, %v2321_v56  }
 0x3ac   :  { %803 = vperm.xlu0 %1771, %v2315_v40  }
 0x3af   :  { %659 = vperm.xlu1 %1765, %v2331_v16  }
 0x3b0   :  { %815 = vperm.xlu0 %1771, %v2325_v8  }
 0x3b3   :  { %1767 = vset.pattern.permute.xlu1 %v1840_v55 }
 0x3b4   :  { %819 = vperm.xlu0 %1771, %v2331_v16   ;;  %715 = vperm.xlu1 %1767, %v2309_v29  }
 0x3b8   :  { %1775 = vset.pattern.permute.xlu0 %v1842_v18  ;;  %719 = vperm.xlu1 %1767, %v2312_v6  }
 0x3b9   :  { %923 = vperm.xlu0 %1775, %v2309_v29  }
 0x3bc   :  { %1768 = vset.pattern.permute.xlu1 %v1839_v58 }
 0x3bd   :  { %939 = vperm.xlu0 %1775, %v2319_v54   ;;  %663 = vperm.xlu1 %1768, %v2339_v25  }
 0x3c1   :  { %935 = vperm.xlu0 %1775, %v2321_v56   ;;  %1770 = vset.pattern.permute.xlu1 %v1840_v55 }
 0x3c2   :  { %731 = vperm.xlu1 %1770, %v2319_v54  }
 0x3c5   :  { %1777 = vset.pattern.permute.xlu0 %v1843_v47 }
 0x3c6   :  { %1003 = vperm.xlu0 %1777, %v2309_v29   ;;  %735 = vperm.xlu1 %1770, %v2325_v8  }
 0x3ca   :  { %1011 = vperm.xlu0 %1777, %v2315_v40   ;;  %739 = vperm.xlu1 %1770, %v2331_v16  }
 0x3ce   :  { %1023 = vperm.xlu0 %1777, %v2325_v8   ;;  %1772 = vset.pattern.permute.xlu1 %v1841_v4 }
 0x3cf   :  { %799 = vperm.xlu1 %1772, %v2312_v6  }
 0x3d2   :  { %1027 = vperm.xlu0 %1777, %v2331_v16  }
 0x3d3   :  { %1773 = vset.pattern.permute.xlu1 %v1840_v55 }
 0x3d4   :  { %743 = vperm.xlu1 %1773, %v2339_v25  }
 0x3d6   :  { %1782 = vset.pattern.permute.xlu0 %v1844_v15 }
 0x3d7   :  { %1087 = vperm.xlu0 %1782, %v2312_v6  }
 0x3d8   :  { %1774 = vset.pattern.permute.xlu1 %v1841_v4 }
 0x3d9   :  { %811 = vperm.xlu1 %1774, %v2319_v54  }
 0x3db   :  { %1099 = vperm.xlu0 %1782, %v2319_v54  }
 0x3dd   :  { %807 = vperm.xlu1 %1774, %v2321_v56  }
 0x3df   :  { %1095 = vperm.xlu0 %1782, %v2321_v56  }
 0x3e1   :  { %823 = vperm.xlu1 %1774, %v2339_v25  }
 0x3e3   :  { %1111 = vperm.xlu0 %1782, %v2339_v25  }
 0x3e5   :  { %1776 = vset.pattern.permute.xlu1 %v1842_v18 }
 0x3e6   :  { %927 = vperm.xlu1 %1776, %v2312_v6  }
 0x3e7   :  { %1786 = vset.pattern.permute.xlu0 %v1845_v26 }
 0x3e8   :  { %585 = vperm.xlu0 %1786, %v2312_v6  }
 0x3ea   :  { %931 = vperm.xlu1 %1776, %v2315_v40  }
 0x3ec   :  { %605 = vperm.xlu0 %1786, %v2325_v8  }
 0x3ee   :  { %943 = vperm.xlu1 %1776, %v2325_v8  }
 0x3f0   :  { %610 = vperm.xlu0 %1786, %v2331_v16  }
 0x3f2   :  { %947 = vperm.xlu1 %1776, %v2331_v16  }
 0x3f3   :  { %v636_v20 = vpop.permute.xlu1 %635 }
 0x3f4   :  { %1787 = vset.pattern.permute.xlu0 %v1846_v27  ;;  %v666_v59 = vmul.f32 %v636_v20, %v1931_v12 }
 0x3f5   :  { %875 = vperm.xlu0 %1787, %v2309_v29  }
 0x3f6   :  { %1778 = vset.pattern.permute.xlu1 %v1843_v47 }
 0x3f7   :  { %1007 = vperm.xlu1 %1778, %v2312_v6  }
 0x3f9   :  { %891 = vperm.xlu0 %1787, %v2319_v54  }
 0x3fb   :  { %1779 = vset.pattern.permute.xlu1 %v1842_v18 }
 0x3fc   :  { %951 = vperm.xlu1 %1779, %v2339_v25  }
 0x3fd   :  { %887 = vperm.xlu0 %1787, %v2321_v56  }
 0x400   :  { %1780 = vset.pattern.permute.xlu1 %v1843_v47 }
 0x401   :  { %903 = vperm.xlu0 %1787, %v2339_v25   ;;  %1019 = vperm.xlu1 %1780, %v2319_v54  }
 0x405   :  { %1015 = vperm.xlu1 %1780, %v2321_v56   ;;  %682 = vrot.lane.b32.xlu0 %v666_v59, %s1833_s15 }
 0x406   :  { %1789 = vset.pattern.permute.xlu0 %v1844_v15 }
 0x409   :  { %1781 = vset.pattern.permute.xlu1 %v1844_v15 }
 0x40a   :  { %1083 = vperm.xlu1 %1781, %v2309_v29  }
 0x40e   :  { %1783 = vset.pattern.permute.xlu1 %v1843_v47 }
 0x40f   :  { %1031 = vperm.xlu1 %1783, %v2339_v25  }
 0x413   :  { %1784 = vset.pattern.permute.xlu1 %v1844_v15 }
 0x414   :  { %1091 = vperm.xlu1 %1784, %v2315_v40  }
 0x416   :  { %v640_v58 = vpop.permute.xlu0 %639 }
 0x417   :  { %v667_v24 = vmul.f32 %v640_v58, %v1931_v12 }
 0x418   :  { %1103 = vperm.xlu1 %1784, %v2325_v8  }
 0x41c   :  { %1107 = vperm.xlu1 %1784, %v2331_v16  }
 0x41e   :  { %v724_v33 = vpop.permute.xlu0 %723  ;;  %v644_v9 = vpop.permute.xlu1 %643 }
 0x41f   :  { %v668_v53 = vmul.f32 %v644_v9, %v1931_v12  ;;  %v748_v51 = vmul.f32 %v724_v33, %v1931_v12 }
 0x420   :  { %1785 = vset.pattern.permute.xlu1 %v1845_v26 }
 0x421   :  { %580 = vperm.xlu1 %1785, %v2309_v29  }
 0x422   :  { %v728_v31 = vpop.permute.xlu0 %727  ;;  %v652_v13 = vpop.permute.xlu1 %651 }
 0x423   :  { %v670_v32 = vmul.f32 %v652_v13, %v1931_v12  ;;  %v749_v48 = vmul.f32 %v728_v31, %v1931_v12 }
 0x425   :  { %590 = vperm.xlu1 %1785, %v2315_v40   ;;  %690 = vrot.lane.b32.xlu0 %v670_v32, %s1833_s15 }
 0x426   :  { %v656_v62 = vpop.permute.xlu1 %655 }
 0x427   :  { %v796_v22 = vpop.permute.xlu0 %795  ;;  %v671_v34 = vmul.f32 %v656_v62, %v1931_v12 }
 0x428   :  { %v826_v7 = vmul.f32 %v796_v22, %v1931_v12 }
 0x429   :  { %600 = vperm.xlu1 %1785, %v2319_v54  }
 0x42a   :  { %v648_v38 = vpop.permute.xlu1 %647 }
 0x42b   :  { %v669_v0 = vmul.f32 %v648_v38, %v1931_v12  ;;  %v2389_v2 = vpop.permute.xlu0 %803 }
 0x42c   :  { %v828_v58 = vmul.f32 %v2389_v2, %v1931_v12 }
 0x42d   :  { %595 = vperm.xlu1 %1785, %v2321_v56   ;;  %688 = vrot.lane.b32.xlu0 %v669_v0, %s1833_s15 }
 0x42e   :  { %v660_v30 = vpop.permute.xlu1 %659 }
 0x42f   :  { %v2393_v3 = vpop.permute.xlu0 %815  ;;  %v672_v57 = vmul.f32 %v660_v30, %v1931_v12 }
 0x430   :  { %v831_v13 = vmul.f32 %v2393_v3, %v1931_v12 }
 0x431   :  { %615 = vperm.xlu1 %1785, %v2339_v25  }
 0x433   :  { %v2396_v28 = vpop.permute.xlu0 %819  ;;  %v716_v36 = vpop.permute.xlu1 %715 }
 0x434   :  { %v746_v17 = vmul.f32 %v716_v36, %v1931_v12  ;;  %v832_v22 = vmul.f32 %v2396_v28, %v1931_v12 }
 0x435   :  { %1788 = vset.pattern.permute.xlu1 %v1846_v27 }
 0x436   :  { %879 = vperm.xlu1 %1788, %v2312_v6   ;;  %762 = vrot.lane.b32.xlu0 %v746_v17, %s1832_s1 }
 0x437   :  { %v720_v39 = vpop.permute.xlu1 %719 }
 0x438   :  { %v2401_v46 = vpop.permute.xlu0 %923  ;;  %v747_v55 = vmul.f32 %v720_v39, %v1931_v12 }
 0x439   :  { %v954_v30 = vmul.f32 %v2401_v46, %v1918_v10 }
 0x43a   :  { %883 = vperm.xlu1 %1788, %v2315_v40  }
 0x43c   :  { %v940_v42 = vpop.permute.xlu0 %939  ;;  %v664_v43 = vpop.permute.xlu1 %663 }
 0x43d   :  { %v673_v11 = vmul.f32 %v664_v43, %v1931_v12  ;;  %v958_v9 = vmul.f32 %v940_v42, %v1918_v10 }
 0x43e   :  { %895 = vperm.xlu1 %1788, %v2325_v8  }
 0x43f   :  { %696 = vrot.lane.b32.xlu0 %v673_v11, %s1833_s15 }
 0x440   :  { %v936_v44 = vpop.permute.xlu0 %935 }
 0x441   :  { %v732_v14 = vpop.permute.xlu1 %731  ;;  %v957_v62 = vmul.f32 %v936_v44, %v1918_v10 }
 0x442   :  { %v750_v37 = vmul.f32 %v732_v14, %v1931_v12  ;;  %899 = vperm.xlu1 %1788, %v2331_v16  }
 0x444   :  { %770 = vrot.lane.b32.xlu0 %v750_v37, %s1832_s1 }
 0x445   :  { %v736_v50 = vpop.permute.xlu1 %735  ;;  %v1004_v23 = vpop.permute.xlu0 %1003 }
 0x446   :  { %684 = vrot.lane.b32.xlu1 %v667_v24, %s1833_s15  ;;  %v751_v4 = vmul.f32 %v736_v50, %v1931_v12  ;;  %v1034_v2 = vmul.f32 %v1004_v23, %v1918_v10 }
 0x448   :  { %768 = vrot.lane.b32.xlu0 %v749_v48, %s1832_s1 }
 0x449   :  { %v740_v45 = vpop.permute.xlu1 %739  ;;  %v2419_v52 = vpop.permute.xlu0 %1011 }
 0x44a   :  { %686 = vrot.lane.b32.xlu1 %v668_v53, %s1833_s15  ;;  %v752_v18 = vmul.f32 %v740_v45, %v1931_v12  ;;  %v1036_v48 = vmul.f32 %v2419_v52, %v1918_v10 }
 0x44c   :  { %842 = vrot.lane.b32.xlu0 %v826_v7, %s1834_s16 }
 0x44d   :  { %v2424_v49 = vpop.permute.xlu0 %1023 }
 0x44e   :  { %692 = vrot.lane.b32.xlu1 %v671_v34, %s1833_s15  ;;  %v800_v60 = vpop.permute.xlu1 %799  ;;  %v1039_v7 = vmul.f32 %v2424_v49, %v1918_v10 }
 0x44f   :  { %v827_v26 = vmul.f32 %v800_v60, %v1931_v12 }
 0x451   :  { %v2431_v1 = vpop.permute.xlu0 %1027 }
 0x452   :  { %694 = vrot.lane.b32.xlu1 %v672_v57, %s1833_s15  ;;  %v1040_v52 = vmul.f32 %v2431_v1, %v1918_v10 }
 0x453   :  { %v744_v41 = vpop.permute.xlu1 %743 }
 0x454   :  { %v753_v19 = vmul.f32 %v744_v41, %v1931_v12 }
 0x456   :  { %764 = vrot.lane.b32.xlu1 %v747_v55, %s1832_s1  ;;  %776 = vrot.lane.b32.xlu0 %v753_v19, %s1832_s1  ;;  %v2439_v5 = vpop.permute.xlu0 %1087 }
 0x457   :  { %v1115_v49 = vmul.f32 %v2439_v5, %v1918_v10 }
 0x458   :  { %v812_v21 = vpop.permute.xlu1 %811 }
 0x459   :  { %v830_v61 = vmul.f32 %v812_v21, %v1931_v12 }
 0x45a   :  { %766 = vrot.lane.b32.xlu1 %v748_v51, %s1832_s1  ;;  %v1100_v27 = vpop.permute.xlu0 %1099 }
 0x45b   :  { %850 = vrot.lane.b32.xlu0 %v830_v61, %s1834_s16  ;;  %v1118_v41 = vmul.f32 %v1100_v27, %v1918_v10 }
 0x45c   :  { %v808_v63 = vpop.permute.xlu1 %807 }
 0x45d   :  { %v829_v35 = vmul.f32 %v808_v63, %v1931_v12 }
 0x45e   :  { %772 = vrot.lane.b32.xlu1 %v751_v4, %s1832_s1  ;;  %v1096_v31 = vpop.permute.xlu0 %1095 }
 0x45f   :  { %848 = vrot.lane.b32.xlu0 %v829_v35, %s1834_s16  ;;  %v1117_v51 = vmul.f32 %v1096_v31, %v1918_v10 }
 0x460   :  { %v824_v47 = vpop.permute.xlu1 %823 }
 0x461   :  { %v833_v15 = vmul.f32 %v824_v47, %v1931_v12 }
 0x462   :  { %774 = vrot.lane.b32.xlu1 %v752_v18, %s1832_s1  ;;  %v1112_v38 = vpop.permute.xlu0 %1111 }
 0x463   :  { %856 = vrot.lane.b32.xlu0 %v833_v15, %s1834_s16  ;;  %v1121_v61 = vmul.f32 %v1112_v38, %v1918_v10 }
 0x465   :  { %v928_v20 = vpop.permute.xlu1 %927 }
 0x466   :  { %v955_v59 = vmul.f32 %v928_v20, %v1918_v10  ;;  %844 = vrot.lane.b32.xlu1 %v827_v26, %s1834_s16 }
 0x467   :  { %v2468_v36 = vpop.permute.xlu0 %585 }
 0x468   :  { %972 = vrot.lane.b32.xlu0 %v955_v59, %s1833_s15 }
 0x469   :  { %v932_v33 = vpop.permute.xlu1 %931 }
 0x46a   :  { %846 = vrot.lane.b32.xlu1 %v828_v58, %s1834_s16  ;;  %v956_v28 = vmul.f32 %v932_v33, %v1918_v10 }
 0x46b   :  { %v2474_v43 = vpop.permute.xlu0 %605 }
 0x46c   :  { %978 = vrot.lane.b32.xlu0 %v958_v9, %s1833_s15 }
 0x46d   :  { %v944_v32 = vpop.permute.xlu1 %943 }
 0x46e   :  { %852 = vrot.lane.b32.xlu1 %v831_v13, %s1834_s16  ;;  %v959_v39 = vmul.f32 %v944_v32, %v1918_v10 }
 0x46f   :  { %v2481_v14 = vpop.permute.xlu0 %610 }
 0x470   :  { %976 = vrot.lane.b32.xlu0 %v957_v62, %s1833_s15 }
 0x471   :  { %v948_v0 = vpop.permute.xlu1 %947 }
 0x472   :  { %854 = vrot.lane.b32.xlu1 %v832_v22, %s1834_s16  ;;  %v960_v46 = vmul.f32 %v948_v0, %v1918_v10 }
 0x474   :  { %1050 = vrot.lane.b32.xlu0 %v1034_v2, %s1832_s1  ;;  %v876_v23 = vpop.permute.xlu0 %875 }
 0x476   :  { %970 = vrot.lane.b32.xlu1 %v954_v30, %s1833_s15  ;;  %v1008_v3 = vpop.permute.xlu1 %1007 }
 0x477   :  { %v1035_v37 = vmul.f32 %v1008_v3, %v1918_v10 }
 0x478   :  { %v2496_v60 = vpop.permute.xlu0 %891 }
 0x47a   :  { %974 = vrot.lane.b32.xlu1 %v956_v28, %s1833_s15 }
 0x47b   :  { %v952_v17 = vpop.permute.xlu1 %951 }
 0x47c   :  { %v961_v42 = vmul.f32 %v952_v17, %v1918_v10  ;;  %v2506_v19 = vpop.permute.xlu0 %887 }
 0x47e   :  { %980 = vrot.lane.b32.xlu1 %v959_v39, %s1833_s15  ;;  %984 = vrot.lane.b32.xlu0 %v961_v42, %s1833_s15 }
 0x480   :  { %v1020_v11 = vpop.permute.xlu1 %1019  ;;  %v904_v4 = vpop.permute.xlu0 %903 }
 0x481   :  { %v1038_v44 = vmul.f32 %v1020_v11, %v1918_v10 }
 0x482   :  { %982 = vrot.lane.b32.xlu1 %v960_v46, %s1833_s15 }
 0x483   :  { %1058 = vrot.lane.b32.xlu0 %v1038_v44, %s1832_s1 }
 0x484   :  { %v1016_v24 = vpop.permute.xlu1 %1015  ;;  %v683_v47 = vpop.permute.xlu0 %682 }
 0x485   :  { %v1037_v50 = vmul.f32 %v1016_v24, %v1918_v10 }
 0x486   :  { %1052 = vrot.lane.b32.xlu1 %v1035_v37, %s1832_s1  ;;  %v906_v37 = vmul.f32 %v876_v23, %v1918_v10  ;;  %v910_v23 = vmul.f32 %v2496_v60, %v1918_v10  ;;  %v913_v60 = vmul.f32 %v904_v4, %v1918_v10 }
 0x487   :  { %1056 = vrot.lane.b32.xlu0 %v1037_v50, %s1832_s1 }
 0x489   :  { %v1084_v53 = vpop.permute.xlu1 %1083 }
 0x48a   :  { %v1114_v45 = vmul.f32 %v1084_v53, %v1918_v10  ;;  %1054 = vrot.lane.b32.xlu1 %v1036_v48, %s1832_s1  ;;  %v619_v53 = vmul.f32 %v2468_v36, %v1931_v12  ;;  %v624_v36 = vmul.f32 %v2481_v14, %v1931_v12 }
 0x48c   :  { %1130 = vrot.lane.b32.xlu0 %v1114_v45, %s1834_s16 }
 0x48e   :  { %1060 = vrot.lane.b32.xlu1 %v1039_v7, %s1832_s1  ;;  %v1032_v34 = vpop.permute.xlu1 %1031 }
 0x48f   :  { %v1041_v57 = vmul.f32 %v1032_v34, %v1918_v10 }
 0x491   :  { %1064 = vrot.lane.b32.xlu0 %v1041_v57, %s1832_s1 }
 0x492   :  { %1062 = vrot.lane.b32.xlu1 %v1040_v52, %s1832_s1 }
 0x493   :  { %v1092_v55 = vpop.permute.xlu1 %1091 }
 0x494   :  { %v1116_v1 = vmul.f32 %v1092_v55, %v1918_v10 }
 0x495   :  { %1138 = vrot.lane.b32.xlu0 %v1118_v41, %s1834_s16 }
 0x496   :  { %1132 = vrot.lane.b32.xlu1 %v1115_v49, %s1834_s16  ;;  %v623_v49 = vmul.f32 %v2474_v43, %v1931_v12 }
 0x497   :  { %v1104_v21 = vpop.permute.xlu1 %1103  ;;  %v691_v20 = vpop.permute.xlu0 %690 }
 0x498   :  { %v1119_v35 = vmul.f32 %v1104_v21, %v1918_v10 }
 0x499   :  { %1136 = vrot.lane.b32.xlu0 %v1117_v51, %s1834_s16 }
 0x49a   :  { %1134 = vrot.lane.b32.xlu1 %v1116_v1, %s1834_s16 }
 0x49b   :  { %v1108_v63 = vpop.permute.xlu1 %1107 }
 0x49c   :  { %v1120_v5 = vmul.f32 %v1108_v63, %v1918_v10 }
 0x49d   :  { %1144 = vrot.lane.b32.xlu0 %v1121_v61, %s1834_s16 }
 0x49e   :  { %1140 = vrot.lane.b32.xlu1 %v1119_v35, %s1834_s16 }
 0x49f   :  { %v689_v58 = vpop.permute.xlu0 %688 }
 0x4a0   :  { %v581_v18 = vpop.permute.xlu1 %580 }
 0x4a1   :  { %v618_v15 = vmul.f32 %v581_v18, %v1931_v12  ;;  %v909_v18 = vmul.f32 %v2506_v19, %v1918_v10 }
 0x4a2   :  { %1142 = vrot.lane.b32.xlu1 %v1120_v5, %s1834_s16 }
 0x4a3   :  { %v706_v26 = vadd.f32 %v683_v47, %v618_v15 }
 0x4a4   :  { %v591_v27 = vpop.permute.xlu1 %590 }
 0x4a5   :  { %v620_v34 = vmul.f32 %v591_v27, %v1931_v12 }
 0x4a8   :  { %v601_v59 = vpop.permute.xlu1 %600  ;;  %v763_v13 = vpop.permute.xlu0 %762 }
 0x4a9   :  { %v622_v33 = vmul.f32 %v601_v59, %v1931_v12  ;;  %v786_v46 = vadd.f32 %v763_v13, %v706_v26 }
 0x4ab   :  { %v710_v9 = vadd.f32 %v691_v20, %v622_v33 }
 0x4ac   :  { %v596_v31 = vpop.permute.xlu1 %595 }
 0x4ad   :  { %v621_v32 = vmul.f32 %v596_v31, %v1931_v12 }
 0x4af   :  { %v709_v62 = vadd.f32 %v689_v58, %v621_v32 }
 0x4b0   :  { %v616_v22 = vpop.permute.xlu1 %615 }
 0x4b1   :  { %v625_v38 = vmul.f32 %v616_v22, %v1931_v12  ;;  %v697_v0 = vpop.permute.xlu0 %696 }
 0x4b3   :  { %v713_v2 = vadd.f32 %v697_v0, %v625_v38 }
 0x4b5   :  { %v880_v30 = vpop.permute.xlu1 %879 }
 0x4b6   :  { %v771_v3 = vpop.permute.xlu0 %770  ;;  %v907_v19 = vmul.f32 %v880_v30, %v1918_v10 }
 0x4b7   :  { %v790_v28 = vadd.f32 %v771_v3, %v710_v9 }
 0x4b9   :  { %v884_v17 = vpop.permute.xlu1 %883 }
 0x4ba   :  { %v769_v39 = vpop.permute.xlu0 %768 }
 0x4bb   :  { %v789_v42 = vadd.f32 %v769_v39, %v709_v62 }
 0x4bd   :  { %v896_v11 = vpop.permute.xlu1 %895 }
 0x4be   :  { %v843_v44 = vpop.permute.xlu0 %842 }
 0x4bf   :  { %v866_v24 = vadd.f32 %v843_v44, %v786_v46  ;;  %v911_v46 = vmul.f32 %v896_v11, %v1918_v10 }
 0x4c1   :  { %v900_v50 = vpop.permute.xlu1 %899  ;;  %v914_v48 = vadd.f32 %v906_v37, %v866_v24 }
 0x4c2   :  { %v912_v30 = vmul.f32 %v900_v50, %v1918_v10  ;;  %v1243_v50 = vld [vmem:[%s2680_s2 + $0x8] sm:$0xff] }
 0x4c5   :  { %v685_v45 = vpop.permute.xlu1 %684 }
 0x4c6   :  { %v707_v7 = vadd.f32 %v685_v45, %v619_v53 }
 0x4c8   :  { %v777_v57 = vpop.permute.xlu0 %776 }
 0x4c9   :  { %v793_v52 = vadd.f32 %v777_v57, %v713_v2  ;;  %v687_v41 = vpop.permute.xlu1 %686  ;;  %v908_v2 = vmul.f32 %v884_v17, %v1918_v10  ;;  %v1242_v10 = vld [vmem:[%s2680_s2] sm:$0xff] }
 0x4ca   :  { %v708_v55 = vadd.f32 %v687_v41, %v620_v34 }
 0x4cd   :  { %v851_v51 = vpop.permute.xlu0 %850  ;;  %v693_v21 = vpop.permute.xlu1 %692 }
 0x4ce   :  { %v870_v1 = vadd.f32 %v851_v51, %v790_v28  ;;  %v711_v61 = vadd.f32 %v693_v21, %v623_v49 }
 0x4d0   :  { %v2534_v63 = vadd.f32 %v910_v23, %v870_v1 }
 0x4d1   :  { %v849_v35 = vpop.permute.xlu0 %848  ;;  %v695_v5 = vpop.permute.xlu1 %694 }
 0x4d2   :  { %v869_v47 = vadd.f32 %v849_v35, %v789_v42  ;;  %v712_v15 = vadd.f32 %v695_v5, %v624_v36  ;;  %v1710_v5 = vpack.c.bf16 %v1243_v50, %v1242_v10  ;;  %v1831_v10 = vld [vmem:[%s2678_s0] sm:$0xff] }
 0x4d4   :  { %v2538_v43 = vadd.f32 %v909_v18, %v869_v47  ;;  %1711 = vmatprep.subr.bf16.mxu1 %v1710_v5 }
 0x4d5   :  { %v857_v26 = vpop.permute.xlu0 %856  ;;  %v765_v27 = vpop.permute.xlu1 %764  ;;  %1713 = vmatpush3.bf16.msra.mxu1 %v1710_v5 }
 0x4d6   :  { %v873_v20 = vadd.f32 %v857_v26, %v793_v52  ;;  %v787_v31 = vadd.f32 %v765_v27, %v707_v7  ;;  %v1244_v26 = vld [vmem:[%s2680_s2 + $0x10] sm:$0xff]  ;;  %v1245_v27 = vld [vmem:[%s2680_s2 + $0x18] sm:$0xff] }
 0x4d8   :  { %v2541_v59 = vadd.f32 %v913_v60, %v873_v20  ;;  %v1714_v20 = vpack.c.bf16 %v1245_v27, %v1244_v26 }
 0x4d9   :  { %v767_v58 = vpop.permute.xlu1 %766 }
 0x4da   :  { %v973_v12 = vpop.permute.xlu0 %972  ;;  %v788_v22 = vadd.f32 %v767_v58, %v708_v55  ;;  %1715 = vmatprep.subr.bf16.mxu1 %v1714_v20 }
 0x4db   :  { %1717 = vmatpush3.bf16.msra.mxu1 %v1714_v20 }
 0x4dd   :  { %v773_v14 = vpop.permute.xlu1 %772 }
 0x4de   :  { %v979_v33 = vpop.permute.xlu0 %978  ;;  %v791_v3 = vadd.f32 %v773_v14, %v711_v61 }
 0x4df   :  { %v998_v58 = vadd.f32 %v979_v33, %v2534_v63 }
 0x4e1   :  { %v775_v9 = vpop.permute.xlu1 %774 }
 0x4e2   :  { %v977_v32 = vpop.permute.xlu0 %976  ;;  %v792_v37 = vadd.f32 %v775_v9, %v712_v15 }
 0x4e5   :  { %v845_v13 = vpop.permute.xlu1 %844 }
 0x4e6   :  { %v867_v62 = vadd.f32 %v845_v13, %v787_v31  ;;  %v1051_v28 = vpop.permute.xlu0 %1050 }
 0x4e8   :  { %v915_v38 = vadd.f32 %v907_v19, %v867_v62  ;;  %v997_v62 = vadd.f32 %v977_v32, %v2538_v43 }
 0x4e9   :  { %v847_v0 = vpop.permute.xlu1 %846 }
 0x4ea   :  { %v868_v4 = vadd.f32 %v847_v0, %v788_v22  ;;  %v995_v18 = vadd.f32 %v973_v12, %v915_v38 }
 0x4ec   :  { %v916_v39 = vadd.f32 %v908_v2, %v868_v4 }
 0x4ed   :  { %v853_v42 = vpop.permute.xlu1 %852 }
 0x4ee   :  { %v871_v44 = vadd.f32 %v853_v42, %v791_v3 }
 0x4f0   :  { %v985_v24 = vpop.permute.xlu0 %984  ;;  %v919_v53 = vadd.f32 %v911_v46, %v871_v44 }
 0x4f1   :  { %v855_v45 = vpop.permute.xlu1 %854  ;;  %v1001_v33 = vadd.f32 %v985_v24, %v2541_v59 }
 0x4f2   :  { %v872_v7 = vadd.f32 %v855_v45, %v792_v37 }
 0x4f4   :  { %v920_v34 = vadd.f32 %v912_v30, %v872_v7 }
 0x4f5   :  { %v1059_v57 = vpop.permute.xlu0 %1058  ;;  %v971_v52 = vpop.permute.xlu1 %970 }
 0x4f6   :  { %v994_v41 = vadd.f32 %v971_v52, %v914_v48  ;;  %v1078_v12 = vadd.f32 %v1059_v57, %v998_v58 }
 0x4f8   :  { %v1074_v51 = vadd.f32 %v1051_v28, %v994_v41 }
 0x4f9   :  { %v1057_v17 = vpop.permute.xlu0 %1056  ;;  %v975_v55 = vpop.permute.xlu1 %974 }
 0x4fa   :  { %v996_v14 = vadd.f32 %v975_v55, %v916_v39  ;;  %v1077_v2 = vadd.f32 %v1057_v17, %v997_v62  ;;  %v1463_v62 = vld [vmem:[%s2682_s4] sm:$0xff] }
 0x4fd   :  { %v981_v49 = vpop.permute.xlu1 %980 }
 0x4fe   :  { %v1131_v21 = vpop.permute.xlu0 %1130  ;;  %v999_v22 = vadd.f32 %v981_v49, %v919_v53 }
 0x4ff   :  { %v1154_v23 = vadd.f32 %v1131_v21, %v1074_v51  ;;  %v1609_v21 = vld [vmem:[%s2679_s5 + $0x2] ss:$0 sm:$0xff] }
 0x501   :  { %1163 = vrot.lane.b32.xlu1 %v1154_v23, %s1847_s21  ;;  %v983_v11 = vpop.permute.xlu1 %982 }
 0x502   :  { %v1000_v3 = vadd.f32 %v983_v11, %v920_v34 }
 0x503   :  { %v1065_v36 = vpop.permute.xlu0 %1064 }
 0x504   :  { %v1081_v46 = vadd.f32 %v1065_v36, %v1001_v33  ;;  %v1830_v36 = vld [vmem:[%s2678_s0 + $0x8] sm:$0xff]  ;;  %s1848_s0 = smov 8  }
 0x505   :  { %v1053_v1 = vpop.permute.xlu1 %1052 }
 0x506   :  { %v1075_v15 = vadd.f32 %v1053_v1, %v995_v18 }
 0x507   :  { %v1139_v47 = vpop.permute.xlu0 %1138 }
 0x508   :  { %v1158_v38 = vadd.f32 %v1139_v47, %v1078_v12  ;;  %v1372_v12 = vld [vmem:[%s2681_s3] sm:$0xff] }
 0x509   :  { %v1055_v61 = vpop.permute.xlu1 %1054 }
 0x50a   :  { %v1076_v31 = vadd.f32 %v1055_v61, %v996_v14 }
 0x50b   :  { %v1137_v13 = vpop.permute.xlu0 %1136 }
 0x50c   :  { %v1157_v28 = vadd.f32 %v1137_v13, %v1077_v2  ;;  %v1374_v13 = vld [vmem:[%s2681_s3 + $0x10] sm:$0xff]  ;;  %v1467_v2 = vld [vmem:[%s2682_s4 + $0x20] sm:$0xff] }
 0x50d   :  { %v1061_v35 = vpop.permute.xlu1 %1060 }
 0x50e   :  { %v1079_v4 = vadd.f32 %v1061_v35, %v999_v22  ;;  %v1465_v22 = vld [vmem:[%s2682_s4 + $0x10] sm:$0xff] }
 0x50f   :  { %v1145_v42 = vpop.permute.xlu0 %1144 }
 0x510   :  { %v1161_v32 = vadd.f32 %v1145_v42, %v1081_v46 }
 0x511   :  { %v1063_v48 = vpop.permute.xlu1 %1062 }
 0x512   :  { %v1080_v44 = vadd.f32 %v1063_v48, %v1000_v3 }
 0x515   :  { %v1133_v60 = vpop.permute.xlu1 %1132 }
 0x516   :  { %v1155_v9 = vadd.f32 %v1133_v60, %v1075_v15 }
 0x518   :  { %1167 = vrot.lane.b32.xlu0 %v1155_v9, %s1838_s20 }
 0x519   :  { %v1135_v19 = vpop.permute.xlu1 %1134 }
 0x51a   :  { %v1156_v0 = vadd.f32 %v1135_v19, %v1076_v31  ;;  %v1373_v31 = vld [vmem:[%s2681_s3 + $0x8] sm:$0xff] }
 0x51b   :  { %v1718_v19 = vpack.c.bf16 %v1373_v31, %v1372_v12 }
 0x51c   :  { %1184 = vrot.lane.b32.xlu0 %v1158_v38, %s1847_s21  ;;  %1171 = vrot.lane.b32.xlu1 %v1156_v0, %s1837_s19  ;;  %s1851_s21 = smov 48   ;;  %v1466_v0 = vld [vmem:[%s2682_s4 + $0x18] sm:$0xff] }
 0x51d   :  { %v1141_v63 = vpop.permute.xlu1 %1140  ;;  %1719 = vmatprep.subr.bf16.mxu0 %v1718_v19 }
 0x51e   :  { %v1159_v39 = vadd.f32 %v1141_v63, %v1079_v4  ;;  %1721 = vmatpush3.bf16.msra.mxu0 %v1718_v19  ;;  %v1468_v4 = vld [vmem:[%s2682_s4 + $0x28] sm:$0xff] }
 0x51f   :  { %v1734_v63 = vpack.c.bf16 %v1468_v4, %v1467_v2 }
 0x520   :  { %1175 = vrot.lane.b32.xlu0 %v1157_v28, %s1836_s18  ;;  %1188 = vrot.lane.b32.xlu1 %v1159_v39, %s1838_s20  ;;  %s1854_s20 = smov 56  }
 0x521   :  { %v1143_v43 = vpop.permute.xlu1 %1142 }
 0x522   :  { %v1160_v37 = vadd.f32 %v1143_v43, %v1080_v44  ;;  %v1612_v43 = vld [vmem:[%s2679_s5 + $0x4] ss:$0 sm:$0xff] }
 0x524   :  { %1196 = vrot.lane.b32.xlu0 %v1161_v32, %s1836_s18  ;;  %1192 = vrot.lane.b32.xlu1 %v1160_v37, %s1837_s19  ;;  %s1850_s18 = smov 32   ;;  %s1853_s19 = smov 40  }
 0x573   :  { %v1164_v53 = vpop.permute.xlu1 %1163 }
 0x58a   :  { %v1168_v45 = vpop.permute.xlu0 %1167 }
 0x58b   :  { %v1178_v30 = vsel %vm149_vm1, %v1164_v53, %v1168_v45  ;;  %v1613_v45 = vld [vmem:[%s2679_s5 + $0x5] ss:$0 sm:$0xff] }
 0x58e   :  { %v1185_v59 = vpop.permute.xlu0 %1184  ;;  %v1172_v24 = vpop.permute.xlu1 %1171 }
 0x58f   :  { %v1180_v7 = vsel %vm1179_vm9, %v1178_v30, %v1172_v24 }
 0x592   :  { %v1176_v34 = vpop.permute.xlu0 %1175  ;;  %v1189_v57 = vpop.permute.xlu1 %1188 }
 0x593   :  { %v1182_v52 = vsel %vm1181_vm10, %v1180_v7, %v1176_v34  ;;  %v1199_v41 = vsel %vm149_vm1, %v1185_v59, %v1189_v57  ;;  %v1469_v34 = vld [vmem:[%s2682_s4 + $0x30] sm:$0xff]  ;;  %v1470_v57 = vld [vmem:[%s2682_s4 + $0x38] sm:$0xff] }
 0x594   :  { %1669 = vmatprep.mubr.msk.f32.mxu1 %vm36_vm0, %v1182_v52  ;;  %v1738_v52 = vpack.c.bf16 %v1470_v57, %v1469_v34 }
 0x596   :  { %v1197_v17 = vpop.permute.xlu0 %1196  ;;  %v1193_v55 = vpop.permute.xlu1 %1192 }
 0x597   :  { %v1200_v49 = vsel %vm1179_vm9, %v1199_v41, %v1193_v55  ;;  %v1614_v41 = vld [vmem:[%s2679_s5 + $0x1] ss:$0 sm:$0xff] }
 0x598   :  { %v1201_v51 = vsel %vm1181_vm10, %v1200_v49, %v1197_v17 }
 0x599   :  { %1670 = vmatmul.mubr.msk.f32.vlgmr.msra.gmra.mrb[0].mxu1 %vm36_vm0, %v1201_v51 }
 0x66c   :  { %v1671_v23 = vpop.f32.mrb[0].mxu1 }
 0x66d   :  { %v1328_v11 = vadd.f32 %v1671_v23, %v1609_v21  ;;  %v1322_v1 = vpop.f32.mrb[1].mxu1 }
 0x66e   :  { %v1323_v61 = vadd.f32 %v1609_v21, %v1322_v1 }
 0x66f   :  { %v1332_v35 = vadd.f32 %v1830_v36, %v1328_v11  ;;  %v1617_v11 = vld [vmem:[%s2679_s5 + $0x3] ss:$0 sm:$0xff] }
 0x670   :  { %v1331_v50 = vadd.f32 %v1831_v10, %v1323_v61 }
 0x671   :  { %v1336_v48 = vsel %vm36_vm0, %v1332_v35, 0.0 }
 0x672   :  { %1337 = vadd.xlane.f32.xlu0 %v1336_v48  ;;  %v1333_v5 = vsel %vm36_vm0, %v1331_v50, 0.0 }
 0x673   :  { %1334 = vadd.xlane.f32.xlu1 %v1333_v5 }
 0x6ff   :  { %v1338_v18 = vpop.xlane.xlu0 %1337 }
 0x700   :  { %v1341_v47 = vmul.f32 0.03125, %v1338_v18  ;;  %v1335_v15 = vpop.xlane.xlu1 %1334 }
 0x701   :  { %v1340_v26 = vmul.f32 0.03125, %v1335_v15 }
 0x702   :  { %v1343_v27 = vsub.f32 %v1332_v35, %v1341_v47 }
 0x703   :  { %v1342_v60 = vsub.f32 %v1331_v50, %v1340_v26 }
 0x704   :  { %v1345_v20 = vmul.f32 %v1343_v27, %v1343_v27 }
 0x705   :  { %v1344_v58 = vmul.f32 %v1342_v60, %v1342_v60 }
 0x706   :  { %v1349_v14 = vsel %vm36_vm0, %v1345_v20, 0.0 }
 0x707   :  { %1350 = vadd.xlane.f32.xlu1 %v1349_v14  ;;  %v1346_v9 = vsel %vm36_vm0, %v1344_v58, 0.0 }
 0x708   :  { %1347 = vadd.xlane.f32.xlu0 %v1346_v9 }
 0x71e   :  { %1202 = vrot.lane.b32.xlu0 %v2312_v6, %s1848_s0  ;;  %v1375_v6 = vld [vmem:[%s2681_s3 + $0x18] sm:$0xff] }
 0x722   :  { %1208 = vrot.lane.b32.xlu0 %v2321_v56, %s1849_s12  ;;  %v1722_v56 = vpack.c.bf16 %v1375_v6, %v1374_v13 }
 0x724   :  { %1723 = vmatprep.subr.bf16.mxu0 %v1722_v56 }
 0x725   :  { %1725 = vmatpush3.bf16.msra.mxu0 %v1722_v56 }
 0x726   :  { %1211 = vrot.lane.b32.xlu0 %v2319_v54, %s1850_s18  ;;  %v1464_v54 = vld [vmem:[%s2682_s4 + $0x8] sm:$0xff]  ;;  %s1852_s18 = smov 16  }
 0x727   :  { %v1726_v38 = vpack.c.bf16 %v1464_v54, %v1463_v62 }
 0x729   :  { %1727 = vmatprep.subr.bf16.mxu1 %v1726_v38 }
 0x72a   :  { %1217 = vrot.lane.b32.xlu0 %v2331_v16, %s1851_s21  ;;  %v1730_v16 = vpack.c.bf16 %v1466_v0, %v1465_v22  ;;  %1729 = vmatpush3.bf16.msra.mxu1 %v1726_v38 }
 0x72c   :  { %1731 = vmatprep.subr.bf16.mxu1 %v1730_v16 }
 0x72e   :  { %1733 = vmatpush3.bf16.msra.mxu1 %v1730_v16 }
 0x72f   :  { %1735 = vmatprep.subr.bf16.mxu1 %v1734_v63 }
 0x732   :  { %1737 = vmatpush3.bf16.msra.mxu1 %v1734_v63 }
 0x733   :  { %1739 = vmatprep.subr.bf16.mxu1 %v1738_v52 }
 0x736   :  { %1741 = vmatpush3.bf16.msra.mxu1 %v1738_v52 }
 0x794   :  { %v1351_v33 = vpop.xlane.xlu1 %1350 }
 0x795   :  { %v1353_v3 = vmul.f32 0.03125, %v1351_v33  ;;  %v1348_v28 = vpop.xlane.xlu0 %1347 }
 0x796   :  { %v1352_v39 = vmul.f32 0.03125, %v1348_v28  ;;  %v1620_v28 = vld [vmem:[%s2679_s5 + $0x6] ss:$0 sm:$0xff] }
 0x797   :  { %v1355_v42 = vadd.f32 1e-05, %v1353_v3 }
 0x798   :  { %v1354_v46 = vadd.f32 1e-05, %v1352_v39 }
 0x799   :  { %1822 = vrsqrt.f32 %v1355_v42  ;;  %v1203_v18 = vpop.permute.xlu0 %1202  ;;  %v1621_v42 = vld [vmem:[%s2679_s5 + $0x7] ss:$0 sm:$0xff] }
 0x79a   :  { %1824 = vrsqrt.f32 %v1354_v46 }
 0x79d   :  { %v1209_v26 = vpop.permute.xlu0 %1208 }
 0x7a3   :  { %v1823_v44 = vpop.eup %1822 }
 0x7a4   :  { %v1825_v32 = vpop.eup %1824  ;;  %v1359_v37 = vmul.f32 %v1823_v44, %v1343_v27 }
 0x7a5   :  { %v1358_v53 = vmul.f32 %v1825_v32, %v1342_v60 }
 0x7a6   :  { %v1365_v59 = vmul.f32 %v1612_v43, %v1359_v37 }
 0x7a7   :  { %v1364_v24 = vmul.f32 %v1612_v43, %v1358_v53 }
 0x7a8   :  { %v1371_v7 = vadd.f32 %v1613_v45, %v1365_v59 }
 0x7a9   :  { %v1370_v30 = vadd.f32 %v1613_v45, %v1364_v24 }
 0x7ab   :  { %1680 = vmatprep.mubr.msk.f32.mxu0 %vm36_vm0, %v1370_v30 }
 0x7ac   :  { %1681 = vmatmul.mubr.msk.f32.vlgmr.msra.gmra.mrb[2].mxu0 %vm36_vm0, %v1371_v7 }
 0x87f   :  { %v1682_v17 = vpop.f32.mrb[2].mxu0 }
 0x880   :  { %v1458_v55 = vadd.f32 %v1682_v17, %v1614_v41  ;;  %v1452_v49 = vpop.f32.mrb[3].mxu0 }
 0x881   :  { %v1453_v51 = vadd.f32 %v1614_v41, %v1452_v49 }
 0x882   :  { %v1462_v23 = vmax.f32 %v1458_v55, 0.0 }
 0x883   :  { %v1461_v21 = vmax.f32 %v1453_v51, 0.0 }
 0x885   :  { %1699 = vmatprep.mubr.msk.f32.mxu1 %vm1233_vm11, %v1461_v21 }
 0x886   :  { %1700 = vmatmul.mubr.msk.f32.vlgmr.msra.gmra.mrb[2].mxu1 %vm1233_vm11, %v1462_v23 }
 0x959   :  { %v1701_v1 = vpop.f32.mrb[2].mxu1 }
 0x95a   :  { %v1547_v61 = vpop.f32.mrb[3].mxu1  ;;  %v1553_v36 = vadd.f32 %v1701_v1, %v1617_v11 }
 0x95b   :  { %v1548_v35 = vadd.f32 %v1617_v11, %v1547_v61 }
 0x95c   :  { %v1557_v50 = vadd.f32 %v1553_v36, %v1371_v7 }
 0x95d   :  { %v1556_v10 = vadd.f32 %v1548_v35, %v1370_v30 }
 0x95e   :  { %v1561_v5 = vsel %vm36_vm0, %v1557_v50, 0.0 }
 0x95f   :  { %v1558_v48 = vsel %vm36_vm0, %v1556_v10, 0.0 }
 0x960   :  { %1559 = vadd.xlane.f32.xlu1 %v1558_v48 }
 0x964   :  { %1562 = vadd.xlane.f32.xlu1 %v1561_v5 }
 0x975   :  { %1205 = vrot.lane.b32.xlu1 %v2315_v40, %s1852_s18  ;;  %v1223_v40 = vsel %vm149_vm1, %v2309_v29, %v1203_v18 }
 0x979   :  { %1214 = vrot.lane.b32.xlu1 %v2325_v8, %s1853_s19  ;;  %v1212_v8 = vpop.permute.xlu0 %1211 }
 0x97d   :  { %1220 = vrot.lane.b32.xlu1 %v2339_v25, %s1854_s20  ;;  %v1218_v54 = vpop.permute.xlu0 %1217 }
 0x9ed   :  { %v1560_v47 = vpop.xlane.xlu1 %1559 }
 0x9ee   :  { %v1564_v15 = vmul.f32 0.03125, %v1560_v47 }
 0x9f0   :  { %v1566_v27 = vsub.f32 %v1556_v10, %v1564_v15 }
 0x9f1   :  { %v1563_v60 = vpop.xlane.xlu1 %1562 }
 0x9f2   :  { %v1565_v20 = vmul.f32 0.03125, %v1563_v60  ;;  %v1568_v58 = vmul.f32 %v1566_v27, %v1566_v27 }
 0x9f4   :  { %v1567_v14 = vsub.f32 %v1557_v50, %v1565_v20  ;;  %v1570_v9 = vsel %vm36_vm0, %v1568_v58, 0.0 }
 0x9f5   :  { %1571 = vadd.xlane.f32.xlu0 %v1570_v9  ;;  %v1206_v12 = vpop.permute.xlu1 %1205 }
 0x9f6   :  { %v1224_v31 = vsel %vm1179_vm9, %v1223_v40, %v1206_v12  ;;  %v1569_v25 = vmul.f32 %v1567_v14, %v1567_v14 }
 0x9f7   :  { %v1225_v13 = vsel %vm1181_vm10, %v1224_v31, %v1209_v26 }
 0x9f8   :  { %v1573_v19 = vsel %vm36_vm0, %v1569_v25, 0.0  ;;  %v1226_v6 = vsel %vm36_vm0, %v1225_v13, %v1212_v8 }
 0x9f9   :  { %1574 = vadd.xlane.f32.xlu1 %v1573_v19  ;;  %v1215_v56 = vpop.permute.xlu1 %1214 }
 0x9fa   :  { %v1228_v62 = vsel %vm1227_vm12, %v1226_v6, %v1215_v56 }
 0x9fb   :  { %v1230_v29 = vsel %vm1229_vm13, %v1228_v62, %v1218_v54 }
 0x9fd   :  { %v1221_v22 = vpop.permute.xlu1 %1220 }
 0x9fe   :  { %v1232_v38 = vsel %vm1231_vm14, %v1230_v29, %v1221_v22 }
 0x9ff   :  { %1234 = vst.msk [vmem:[%s2683_s7] sm:$0xff] %vm1233_vm11, %v1232_v38 }
 0xa82   :  { %v1572_v0 = vpop.xlane.xlu0 %1571 }
 0xa83   :  { %v1576_v16 = vmul.f32 0.03125, %v1572_v0 }
 0xa85   :  { %v1578_v2 = vadd.f32 1e-05, %v1576_v16 }
 0xa86   :  { %v1575_v4 = vpop.xlane.xlu1 %1574 }
 0xa87   :  { %1826 = vrsqrt.f32 %v1578_v2  ;;  %v1577_v63 = vmul.f32 0.03125, %v1575_v4 }
 0xa89   :  { %v1579_v33 = vadd.f32 1e-05, %v1577_v63 }
 0xa8b   :  { %1828 = vrsqrt.f32 %v1579_v33 }
 0xa91   :  { %v1827_v3 = vpop.eup %1826 }
 0xa92   :  { %v1582_v39 = vmul.f32 %v1827_v3, %v1566_v27 }
 0xa94   :  { %v1588_v46 = vmul.f32 %v1620_v28, %v1582_v39 }
 0xa95   :  { %v1829_v44 = vpop.eup %1828 }
 0xa96   :  { %v1594_v43 = vadd.f32 %v1621_v42, %v1588_v46  ;;  %v1583_v32 = vmul.f32 %v1829_v44, %v1567_v14 }
 0xa98   :  { %1596 = vst.msk [vmem:[%s2684_s6] sm:$0xff] %vm36_vm0, %v1594_v43  ;;  %v1589_v37 = vmul.f32 %v1620_v28, %v1583_v32 }
 0xa9a   :  { %v1595_v53 = vadd.f32 %v1621_v42, %v1589_v37 }
 0xa9c   :  { %1597 = vst.msk [vmem:[%s2684_s6 + $0x8] sm:$0xff] %vm36_vm0, %v1595_v53 }

</bundles_post_ra>
